<compile_context>
chip_gen: v7x
topology: tpu7x:2x2x1
jax: 0.10.0
libtpu: 0.0.40
codegen_flags: <defaults>
</compile_context>

<pallas_src>
import functools
import math

import jax
import jax.numpy as jnp
from jax.experimental import pallas as pl
from jax.experimental.pallas import tpu as pltpu

# ---------------- scaled-down BERT config ----------------
VOCAB = 512
TYPE_VOCAB = 2
MAX_POS = 64
HIDDEN = 128
NUM_HEADS = 4
HEAD_DIM = HIDDEN // NUM_HEADS
INTERMEDIATE = 512
NUM_LAYERS = 2
NUM_LABELS = 4
LN_EPS = 1e-12

BATCH = 2
SEQ = 16

_ATTN_SCALE = 1.0 / math.sqrt(HEAD_DIM)


# ======================= in-kernel helpers =======================

def _layernorm(y, g, b):
    """LayerNorm over the lane (hidden) axis, f32 math."""
    mu = jnp.mean(y, axis=-1, keepdims=True)
    d = y - mu
    var = jnp.mean(d * d, axis=-1, keepdims=True)
    return d * jax.lax.rsqrt(var + LN_EPS) * g + b


def _gelu(y):
    # tanh-approx GELU. TODO(synk): HF default is erf-based "gelu"; tanh
    # approximation gives small numerical drift vs. the reference model.
    return 0.5 * y * (1.0 + jnp.tanh(0.7978845608028654 * (y + 0.044715 * y * y * y)))


# ======================= Pallas kernels =======================

def _emb_ln_kernel(x_ref, g_ref, b_ref, o_ref):
    """Pure LayerNorm of the summed embeddings (no fake zero residual)."""
    o_ref[...] = _layernorm(x_ref[...], g_ref[...], b_ref[...]).astype(o_ref.dtype)


def _layer_kernel(h_ref, m_ref,
                  wqkv_ref, bqkv_ref, wo_ref, bo_ref, ln1g_ref, ln1b_ref,
                  w1_ref, fb1_ref, w2_ref, fb2_ref, ln2g_ref, ln2b_ref,
                  o_ref):
    """One full transformer layer for one sequence (grid axis = batch).

    h_ref: (S, H) f32, lane-dense. Weights are bf16, biases/LN params f32.
    """
    x = h_ref[...]                                     # (S, H) f32
    x16 = x.astype(jnp.bfloat16)

    # ---- fused QKV projection: (S, H) @ (H, 3H) on the MXU in bf16 ----
    qkv = jnp.dot(x16, wqkv_ref[...], preferred_element_type=jnp.float32)
    qkv = qkv + bqkv_ref[...]                          # (S, 3H) f32
    q = qkv[:, :HIDDEN]
    k = qkv[:, HIDDEN:2 * HIDDEN]
    v = qkv[:, 2 * HIDDEN:]

    amask = m_ref[...]                                 # (1, S) additive mask

    # ---- attention, all heads in-kernel; I/O stays [S, nH*D] lane-dense ----
    # Per-head math uses static lane slices + 2-D dots (f32: tiny FLOPs,
    # keeps the -1e9 mask numerically safe).
    ctx_cols = []
    for hh in range(NUM_HEADS):
        sl = slice(hh * HEAD_DIM, (hh + 1) * HEAD_DIM)
        qh, kh, vh = q[:, sl], k[:, sl], v[:, sl]      # (S, D)
        s = jax.lax.dot_general(qh, kh, (((1,), (1,)), ((), ())),
                                preferred_element_type=jnp.float32)
        s = s * _ATTN_SCALE + amask                    # (S, S)
        s = s - jnp.max(s, axis=-1, keepdims=True)
        p = jnp.exp(s)
        p = p * pl.reciprocal(jnp.sum(p, axis=-1, keepdims=True), approx=True)
        ctx_cols.append(jnp.dot(p, vh, preferred_element_type=jnp.float32))
    ctx = jnp.concatenate(ctx_cols, axis=-1)           # (S, H) f32

    # ---- output projection + residual LayerNorm ----
    attn = jnp.dot(ctx.astype(jnp.bfloat16), wo_ref[...],
                   preferred_element_type=jnp.float32) + bo_ref[...]
    h1 = _layernorm(attn + x, ln1g_ref[...], ln1b_ref[...])

    # ---- FFN (bf16 matmuls, f32 GELU) + residual LayerNorm ----
    f = jnp.dot(h1.astype(jnp.bfloat16), w1_ref[...],
                preferred_element_type=jnp.float32) + fb1_ref[...]
    f = _gelu(f)
    f = jnp.dot(f.astype(jnp.bfloat16), w2_ref[...],
                preferred_element_type=jnp.float32) + fb2_ref[...]
    o_ref[...] = _layernorm(f + h1, ln2g_ref[...], ln2b_ref[...]).astype(o_ref.dtype)


def _head_kernel(cls_ref, pw_ref, pb_ref, cw_ref, cb_ref, oh_ref,
                 logits_ref, loss_ref):
    """Fused pooler(tanh) -> [dropout: identity] -> classifier -> mean CE."""
    pooled = jnp.tanh(
        jnp.dot(cls_ref[...].astype(jnp.bfloat16), pw_ref[...],
                preferred_element_type=jnp.float32) + pb_ref[...])
    # nn.Dropout(0.1) is the identity at inference.
    # TODO(synk): training-mode stochastic dropout (pltpu.prng_*) not implemented.
    logits = jnp.dot(pooled, cw_ref[...],
                     preferred_element_type=jnp.float32) + cb_ref[...]    # (B, L)
    logits_ref[...] = logits.astype(logits_ref.dtype)

    m = jnp.max(logits, axis=-1, keepdims=True)
    lse = jnp.log(jnp.sum(jnp.exp(logits - m), axis=-1, keepdims=True)) + m
    nll = -jnp.sum(oh_ref[...] * (logits - lse), axis=-1, keepdims=True)  # (B, 1)
    loss_ref[...] = jnp.sum(nll, axis=0, keepdims=True) / nll.shape[0]


# ======================= Pallas wrappers =======================

def _bcast_spec(shape):
    """Full-extent block, same tile at every grid step (weights / params)."""
    return pl.BlockSpec(shape, lambda *_: (0,) * len(shape))


def embed_layernorm(x, g, b):
    BS, H = x.shape
    B = BS // SEQ
    return pl.pallas_call(
        _emb_ln_kernel,
        grid=(B,),
        in_specs=[pl.BlockSpec((SEQ, H), lambda i: (i, 0)),
                  _bcast_spec((1, H)), _bcast_spec((1, H))],
        out_specs=pl.BlockSpec((SEQ, H), lambda i: (i, 0)),
        out_shape=jax.ShapeDtypeStruct((BS, H), jnp.float32),
        compiler_params=pltpu.CompilerParams(dimension_semantics=("parallel",)),
    )(x, g, b)


def bert_layer(h, addmask, lp):
    """h: (B*S, H) f32; addmask: (B, 1, S) additive f32; lp: layer params."""
    BS, H = h.shape
    B = BS // SEQ
    tok_spec = pl.BlockSpec((SEQ, H), lambda b: (b, 0))
    mask_spec = pl.BlockSpec((pl.Squeezed(), 1, SEQ), lambda b: (b, 0, 0))
    return pl.pallas_call(
        _layer_kernel,
        grid=(B,),
        in_specs=[tok_spec, mask_spec,
                  _bcast_spec((H, 3 * H)), _bcast_spec((1, 3 * H)),
                  _bcast_spec((H, H)), _bcast_spec((1, H)),
                  _bcast_spec((1, H)), _bcast_spec((1, H)),
                  _bcast_spec((H, INTERMEDIATE)), _bcast_spec((1, INTERMEDIATE)),
                  _bcast_spec((INTERMEDIATE, H)), _bcast_spec((1, H)),
                  _bcast_spec((1, H)), _bcast_spec((1, H))],
        out_specs=tok_spec,
        out_shape=jax.ShapeDtypeStruct((BS, H), jnp.float32),
        compiler_params=pltpu.CompilerParams(dimension_semantics=("parallel",)),
    )(h, addmask,
      lp["wqkv"], lp["bqkv"], lp["wo"], lp["bo"], lp["ln1_g"], lp["ln1_b"],
      lp["w1"], lp["fb1"], lp["w2"], lp["fb2"], lp["ln2_g"], lp["ln2_b"])


def head_and_loss(cls_h, onehot, params):
    """Fused pooler + classifier + mean cross-entropy."""
    B = cls_h.shape[0]
    logits, loss = pl.pallas_call(
        _head_kernel,
        grid=(1,),
        in_specs=[_bcast_spec((B, HIDDEN)),
                  _bcast_spec((HIDDEN, HIDDEN)), _bcast_spec((1, HIDDEN)),
                  _bcast_spec((HIDDEN, NUM_LABELS)), _bcast_spec((1, NUM_LABELS)),
                  _bcast_spec((B, NUM_LABELS))],
        out_specs=(_bcast_spec((B, NUM_LABELS)), _bcast_spec((1, 1))),
        out_shape=(jax.ShapeDtypeStruct((B, NUM_LABELS), jnp.float32),
                   jax.ShapeDtypeStruct((1, 1), jnp.float32)),
    )(cls_h, params["pool_w"], params["pool_b"], params["cls_w"],
      params["cls_b"], onehot)
    return logits, loss


# ======================= parameters =======================

def init_params(key):
    def norm(k, shape, dtype=jnp.float32):
        return (0.02 * jax.random.normal(k, shape, jnp.float32)).astype(dtype)

    keys = iter(jax.random.split(key, 8 + NUM_LAYERS * 8))
    p = {
        "word_emb": norm(next(keys), (VOCAB, HIDDEN)),
        "pos_emb": norm(next(keys), (MAX_POS, HIDDEN)),
        "type_emb": norm(next(keys), (TYPE_VOCAB, HIDDEN)),
        "emb_ln_g": jnp.ones((1, HIDDEN), jnp.float32),
        "emb_ln_b": jnp.zeros((1, HIDDEN), jnp.float32),
        # Matmul weights stored in bf16 (MXU inputs, half the HBM traffic);
        # biases / LN params stay f32.
        "pool_w": norm(next(keys), (HIDDEN, HIDDEN), jnp.bfloat16),
        "pool_b": jnp.zeros((1, HIDDEN), jnp.float32),
        "cls_w": norm(next(keys), (HIDDEN, NUM_LABELS)),
        "cls_b": jnp.zeros((1, NUM_LABELS), jnp.float32),
        "layers": [],
    }
    for _ in range(NUM_LAYERS):
        p["layers"].append(dict(
            wqkv=norm(next(keys), (HIDDEN, 3 * HIDDEN), jnp.bfloat16),
            bqkv=jnp.zeros((1, 3 * HIDDEN), jnp.float32),
            wo=norm(next(keys), (HIDDEN, HIDDEN), jnp.bfloat16),
            bo=jnp.zeros((1, HIDDEN), jnp.float32),
            ln1_g=jnp.ones((1, HIDDEN), jnp.float32),
            ln1_b=jnp.zeros((1, HIDDEN), jnp.float32),
            w1=norm(next(keys), (HIDDEN, INTERMEDIATE), jnp.bfloat16),
            fb1=jnp.zeros((1, INTERMEDIATE), jnp.float32),
            w2=norm(next(keys), (INTERMEDIATE, HIDDEN), jnp.bfloat16),
            fb2=jnp.zeros((1, HIDDEN), jnp.float32),
            ln2_g=jnp.ones((1, HIDDEN), jnp.float32),
            ln2_b=jnp.zeros((1, HIDDEN), jnp.float32),
        ))
    return p


# ======================= forward pass =======================

def bert_with_loss_forward(params, input_ids, attention_mask, token_type_ids,
                           labels=None):
    B, S = input_ids.shape

    # Embedding gathers are glue (no clean rectangular BlockSpec for a gather).
    emb = (jnp.take(params["word_emb"], input_ids, axis=0)
           + params["pos_emb"][None, :S, :]
           + jnp.take(params["type_emb"], token_type_ids, axis=0))       # (B, S, H)
    x = emb.reshape(B * S, HIDDEN)
    h = embed_layernorm(x, params["emb_ln_g"], params["emb_ln_b"])

    # HF-style additive attention mask: 0 where attended, large negative where
    # padded (softmax math is kept in f32 inside the kernel).
    addmask = ((1.0 - attention_mask.astype(jnp.float32)) * -1e9).reshape(B, 1, S)

    for lp in params["layers"]:
        h = bert_layer(h, addmask, lp)

    cls_rows = h.reshape(B, S, HIDDEN)[:, 0, :]                           # (B, H)
    onehot = (jax.nn.one_hot(labels, NUM_LABELS, dtype=jnp.float32)
              if labels is not None
              else jnp.zeros((B, NUM_LABELS), jnp.float32))
    logits, loss_arr = head_and_loss(cls_rows, onehot, params)

    loss = loss_arr[0, 0] if labels is not None else None
    return loss, logits


# ======================= main =======================

if __name__ == "__main__":
    key = jax.random.PRNGKey(0)
    k_param, k_ids, k_lab = jax.random.split(key, 3)

    params = init_params(k_param)

    input_ids = jax.random.randint(k_ids, (BATCH, SEQ), 0, VOCAB, dtype=jnp.int32)
    attention_mask = jnp.ones((BATCH, SEQ), jnp.int32).at[1, SEQ - 4:].set(0)
    token_type_ids = jnp.zeros((BATCH, SEQ), jnp.int32).at[:, SEQ // 2:].set(1)
    labels = jax.random.randint(k_lab, (BATCH,), 0, NUM_LABELS, dtype=jnp.int32)

    fwd = jax.jit(functools.partial(bert_with_loss_forward, params))
    loss, logits = fwd(input_ids, attention_mask, token_type_ids, labels)
    jax.block_until_ready((loss, logits))

    assert logits.shape == (BATCH, NUM_LABELS)
    assert loss.shape == ()
    assert bool(jnp.isfinite(loss)) and bool(jnp.all(jnp.isfinite(logits)))
    print("KERNEL_OK")
</pallas_src>

<mosaic_0001>
module attributes {stable_mosaic.version = 11 : i64} {
  func.func @_emb_ln_kernel(%arg0: i32, %arg1: memref<16x128xf32, #tpu.memory_space<vmem>>, %arg2: memref<1x128xf32, #tpu.memory_space<vmem>>, %arg3: memref<1x128xf32, #tpu.memory_space<vmem>>, %arg4: memref<16x128xf32, #tpu.memory_space<vmem>>) attributes {dimension_semantics = [#tpu.dimension_semantics<parallel>], iteration_bounds = array<i64: 2>, scalar_prefetch = 0 : i64, scratch_operands = 0 : i64, tpu.core_type = #tpu.core_type<tc>, window_params = [{transform_indices = @transform_0, window_bounds = array<i64: 16, 128>}, {pipeline_mode = #tpu.pipeline_mode<synchronous>, transform_indices = @transform_1, window_bounds = array<i64: 1, 128>}, {pipeline_mode = #tpu.pipeline_mode<synchronous>, transform_indices = @transform_2, window_bounds = array<i64: 1, 128>}, {transform_indices = @transform_3, window_bounds = array<i64: 16, 128>}]} {
    %c0 = arith.constant 0 : index
    %c0_0 = arith.constant 0 : index
    %0 = vector.load %arg1[%c0, %c0_0] : memref<16x128xf32, #tpu.memory_space<vmem>>, vector<16x128xf32>
    %c0_1 = arith.constant 0 : index
    %c0_2 = arith.constant 0 : index
    %1 = vector.load %arg2[%c0_1, %c0_2] : memref<1x128xf32, #tpu.memory_space<vmem>>, vector<1x128xf32>
    %c0_3 = arith.constant 0 : index
    %c0_4 = arith.constant 0 : index
    %2 = vector.load %arg3[%c0_3, %c0_4] : memref<1x128xf32, #tpu.memory_space<vmem>>, vector<1x128xf32>
    %cst = arith.constant dense<0.000000e+00> : vector<16xf32>
    %3 = vector.multi_reduction <add>, %0, %cst [1] : vector<16x128xf32> to vector<16xf32>
    %4 = vector.shape_cast %3 : vector<16xf32> to vector<16x1xf32>
    %cst_5 = arith.constant 1.280000e+02 : f32
    %5 = vector.broadcast %cst_5 : f32 to vector<16x1xf32>
    %6 = arith.divf %4, %5 : vector<16x1xf32>
    %7 = vector.broadcast %6 : vector<16x1xf32> to vector<16x128xf32>
    %8 = arith.subf %0, %7 : vector<16x128xf32>
    %9 = arith.mulf %8, %8 : vector<16x128xf32>
    %cst_6 = arith.constant dense<0.000000e+00> : vector<16xf32>
    %10 = vector.multi_reduction <add>, %9, %cst_6 [1] : vector<16x128xf32> to vector<16xf32>
    %11 = vector.shape_cast %10 : vector<16xf32> to vector<16x1xf32>
    %cst_7 = arith.constant 1.280000e+02 : f32
    %12 = vector.broadcast %cst_7 : f32 to vector<16x1xf32>
    %13 = arith.divf %11, %12 : vector<16x1xf32>
    %cst_8 = arith.constant 9.99999996E-13 : f32
    %14 = vector.broadcast %cst_8 : f32 to vector<16x1xf32>
    %15 = arith.addf %13, %14 : vector<16x1xf32>
    %16 = math.rsqrt %15 : vector<16x1xf32>
    %17 = vector.broadcast %16 : vector<16x1xf32> to vector<16x128xf32>
    %18 = arith.mulf %8, %17 : vector<16x128xf32>
    %19 = vector.broadcast %1 : vector<1x128xf32> to vector<16x128xf32>
    %20 = arith.mulf %18, %19 : vector<16x128xf32>
    %21 = vector.broadcast %2 : vector<1x128xf32> to vector<16x128xf32>
    %22 = arith.addf %20, %21 : vector<16x128xf32>
    %c0_9 = arith.constant 0 : index
    %c0_10 = arith.constant 0 : index
    %23 = vector.load %arg4[%c0_9, %c0_10] : memref<16x128xf32, #tpu.memory_space<vmem>>, vector<16x128xf32>
    tpu.vector_store %arg4[%c0_9, %c0_10], %22 {strides = array<i32>} : memref<16x128xf32, #tpu.memory_space<vmem>>, vector<16x128xf32>,
    return
  }
  func.func @transform_0(%arg0: i32) -> (i32, i32) {
    %c0_i32 = arith.constant 0 : i32
    %c0_i32_0 = arith.constant 0 : i32
    return %arg0, %c0_i32 : i32, i32
  }
  func.func @transform_1(%arg0: i32) -> (i32, i32) {
    %c0_i32 = arith.constant 0 : i32
    %c0_i32_0 = arith.constant 0 : i32
    %c0_i32_1 = arith.constant 0 : i32
    return %c0_i32, %c0_i32_0 : i32, i32
  }
  func.func @transform_2(%arg0: i32) -> (i32, i32) {
    %c0_i32 = arith.constant 0 : i32
    %c0_i32_0 = arith.constant 0 : i32
    %c0_i32_1 = arith.constant 0 : i32
    return %c0_i32, %c0_i32_0 : i32, i32
  }
  func.func @transform_3(%arg0: i32) -> (i32, i32) {
    %c0_i32 = arith.constant 0 : i32
    %c0_i32_0 = arith.constant 0 : i32
    return %arg0, %c0_i32 : i32, i32
  }
}

module attributes {stable_mosaic.version = 11 : i64} {
  func.func @_head_kernel(%arg0: i32, %arg1: memref<2x128xf32, #tpu.memory_space<vmem>>, %arg2: memref<128x128xbf16, #tpu.memory_space<vmem>>, %arg3: memref<1x128xf32, #tpu.memory_space<vmem>>, %arg4: memref<128x4xf32, #tpu.memory_space<vmem>>, %arg5: memref<1x4xf32, #tpu.memory_space<vmem>>, %arg6: memref<2x4xf32, #tpu.memory_space<vmem>>, %arg7: memref<2x4xf32, #tpu.memory_space<vmem>>, %arg8: memref<1x1xf32, #tpu.memory_space<vmem>>) attributes {dimension_semantics = [#tpu.dimension_semantics<arbitrary>], iteration_bounds = array<i64: 1>, scalar_prefetch = 0 : i64, scratch_operands = 0 : i64, tpu.core_type = #tpu.core_type<tc>, window_params = [{pipeline_mode = #tpu.pipeline_mode<synchronous>, transform_indices = @transform_0, window_bounds = array<i64: 2, 128>}, {pipeline_mode = #tpu.pipeline_mode<synchronous>, transform_indices = @transform_1, window_bounds = array<i64: 128, 128>}, {pipeline_mode = #tpu.pipeline_mode<synchronous>, transform_indices = @transform_2, window_bounds = array<i64: 1, 128>}, {pipeline_mode = #tpu.pipeline_mode<synchronous>, transform_indices = @transform_3, window_bounds = array<i64: 128, 4>}, {pipeline_mode = #tpu.pipeline_mode<synchronous>, transform_indices = @transform_4, window_bounds = array<i64: 1, 4>}, {pipeline_mode = #tpu.pipeline_mode<synchronous>, transform_indices = @transform_5, window_bounds = array<i64: 2, 4>}, {pipeline_mode = #tpu.pipeline_mode<synchronous>, transform_indices = @transform_6, window_bounds = array<i64: 2, 4>}, {pipeline_mode = #tpu.pipeline_mode<synchronous>, transform_indices = @transform_7, window_bounds = array<i64: 1, 1>}]} {
    %c0 = arith.constant 0 : index
    %c0_0 = arith.constant 0 : index
    %0 = vector.load %arg1[%c0, %c0_0] : memref<2x128xf32, #tpu.memory_space<vmem>>, vector<2x128xf32>
    %1 = arith.truncf %0 : vector<2x128xf32> to vector<2x128xbf16>
    %c0_1 = arith.constant 0 : index
    %c0_2 = arith.constant 0 : index
    %2 = vector.load %arg2[%c0_1, %c0_2] : memref<128x128xbf16, #tpu.memory_space<vmem>>, vector<128x128xbf16>
    %cst = arith.constant dense<0.000000e+00> : vector<2x128xf32>
    %3 = tpu.matmul %1, %2, %cst {dimension_numbers = #tpu.dot_dimension_numbers<[1], [0], [0], [1], [0, 0, 1, 1], [], []>} : vector<2x128xbf16>, vector<128x128xbf16>, vector<2x128xf32> -> vector<2x128xf32>
    %c0_3 = arith.constant 0 : index
    %c0_4 = arith.constant 0 : index
    %4 = vector.load %arg3[%c0_3, %c0_4] : memref<1x128xf32, #tpu.memory_space<vmem>>, vector<1x128xf32>
    %5 = vector.broadcast %4 : vector<1x128xf32> to vector<2x128xf32>
    %6 = arith.addf %3, %5 : vector<2x128xf32>
    %7 = math.tanh %6 : vector<2x128xf32>
    %c0_5 = arith.constant 0 : index
    %c0_6 = arith.constant 0 : index
    %8 = vector.load %arg4[%c0_5, %c0_6] : memref<128x4xf32, #tpu.memory_space<vmem>>, vector<128x4xf32>
    %cst_7 = arith.constant dense<0.000000e+00> : vector<2x4xf32>
    %9 = tpu.matmul %7, %8, %cst_7 {dimension_numbers = #tpu.dot_dimension_numbers<[1], [0], [0], [1], [0, 0, 1, 1], [], []>} : vector<2x128xf32>, vector<128x4xf32>, vector<2x4xf32> -> vector<2x4xf32>
    %c0_8 = arith.constant 0 : index
    %c0_9 = arith.constant 0 : index
    %10 = vector.load %arg5[%c0_8, %c0_9] : memref<1x4xf32, #tpu.memory_space<vmem>>, vector<1x4xf32>
    %11 = vector.broadcast %10 : vector<1x4xf32> to vector<2x4xf32>
    %12 = arith.addf %9, %11 : vector<2x4xf32>
    %c0_10 = arith.constant 0 : index
    %c0_11 = arith.constant 0 : index
    %13 = vector.load %arg7[%c0_10, %c0_11] : memref<2x4xf32, #tpu.memory_space<vmem>>, vector<2x4xf32>
    tpu.vector_store %arg7[%c0_10, %c0_11], %12 {strides = array<i32>} : memref<2x4xf32, #tpu.memory_space<vmem>>, vector<2x4xf32>,
    %cst_12 = arith.constant dense<0xFF800000> : vector<2xf32>
    %14 = vector.multi_reduction <maximumf>, %12, %cst_12 [1] : vector<2x4xf32> to vector<2xf32>
    %15 = vector.shape_cast %14 : vector<2xf32> to vector<2x1xf32>
    %16 = vector.broadcast %15 : vector<2x1xf32> to vector<2x4xf32>
    %17 = arith.subf %12, %16 : vector<2x4xf32>
    %18 = math.exp %17 : vector<2x4xf32>
    %cst_13 = arith.constant dense<0.000000e+00> : vector<2xf32>
    %19 = vector.multi_reduction <add>, %18, %cst_13 [1] : vector<2x4xf32> to vector<2xf32>
    %20 = vector.shape_cast %19 : vector<2xf32> to vector<2x1xf32>
    %21 = math.log %20 : vector<2x1xf32>
    %22 = arith.addf %21, %15 : vector<2x1xf32>
    %c0_14 = arith.constant 0 : index
    %c0_15 = arith.constant 0 : index
    %23 = vector.load %arg6[%c0_14, %c0_15] : memref<2x4xf32, #tpu.memory_space<vmem>>, vector<2x4xf32>
    %24 = vector.broadcast %22 : vector<2x1xf32> to vector<2x4xf32>
    %25 = arith.subf %12, %24 : vector<2x4xf32>
    %26 = arith.mulf %23, %25 : vector<2x4xf32>
    %cst_16 = arith.constant dense<0.000000e+00> : vector<2xf32>
    %27 = vector.multi_reduction <add>, %26, %cst_16 [1] : vector<2x4xf32> to vector<2xf32>
    %28 = vector.shape_cast %27 : vector<2xf32> to vector<2x1xf32>
    %cst_17 = arith.constant 0.000000e+00 : f32
    %29 = vector.broadcast %cst_17 : f32 to vector<2x1xf32>
    %30 = arith.subf %29, %28 : vector<2x1xf32>
    %cst_18 = arith.constant dense<0.000000e+00> : vector<1xf32>
    %31 = vector.multi_reduction <add>, %30, %cst_18 [0] : vector<2x1xf32> to vector<1xf32>
    %32 = vector.shape_cast %31 : vector<1xf32> to vector<1x1xf32>
    %cst_19 = arith.constant 2.000000e+00 : f32
    %33 = vector.broadcast %cst_19 : f32 to vector<1x1xf32>
    %34 = arith.divf %32, %33 : vector<1x1xf32>
    %c0_20 = arith.constant 0 : index
    %c0_21 = arith.constant 0 : index
    %35 = vector.load %arg8[%c0_20, %c0_21] : memref<1x1xf32, #tpu.memory_space<vmem>>, vector<1x1xf32>
    tpu.vector_store %arg8[%c0_20, %c0_21], %34 {strides = array<i32>} : memref<1x1xf32, #tpu.memory_space<vmem>>, vector<1x1xf32>,
    return
  }
  func.func @transform_0(%arg0: i32) -> (i32, i32) {
    %c0_i32 = arith.constant 0 : i32
    %c0_i32_0 = arith.constant 0 : i32
    %c0_i32_1 = arith.constant 0 : i32
    return %c0_i32, %c0_i32_0 : i32, i32
  }
  func.func @transform_1(%arg0: i32) -> (i32, i32) {
    %c0_i32 = arith.constant 0 : i32
    %c0_i32_0 = arith.constant 0 : i32
    %c0_i32_1 = arith.constant 0 : i32
    return %c0_i32, %c0_i32_0 : i32, i32
  }
  func.func @transform_2(%arg0: i32) -> (i32, i32) {
    %c0_i32 = arith.constant 0 : i32
    %c0_i32_0 = arith.constant 0 : i32
    %c0_i32_1 = arith.constant 0 : i32
    return %c0_i32, %c0_i32_0 : i32, i32
  }
  func.func @transform_3(%arg0: i32) -> (i32, i32) {
    %c0_i32 = arith.constant 0 : i32
    %c0_i32_0 = arith.constant 0 : i32
    %c0_i32_1 = arith.constant 0 : i32
    return %c0_i32, %c0_i32_0 : i32, i32
  }
  func.func @transform_4(%arg0: i32) -> (i32, i32) {
    %c0_i32 = arith.constant 0 : i32
    %c0_i32_0 = arith.constant 0 : i32
    %c0_i32_1 = arith.constant 0 : i32
    return %c0_i32, %c0_i32_0 : i32, i32
  }
  func.func @transform_5(%arg0: i32) -> (i32, i32) {
    %c0_i32 = arith.constant 0 : i32
    %c0_i32_0 = arith.constant 0 : i32
    %c0_i32_1 = arith.constant 0 : i32
    return %c0_i32, %c0_i32_0 : i32, i32
  }
  func.func @transform_6(%arg0: i32) -> (i32, i32) {
    %c0_i32 = arith.constant 0 : i32
    %c0_i32_0 = arith.constant 0 : i32
    %c0_i32_1 = arith.constant 0 : i32
    return %c0_i32, %c0_i32_0 : i32, i32
  }
  func.func @transform_7(%arg0: i32) -> (i32, i32) {
    %c0_i32 = arith.constant 0 : i32
    %c0_i32_0 = arith.constant 0 : i32
    %c0_i32_1 = arith.constant 0 : i32
    return %c0_i32, %c0_i32_0 : i32, i32
  }
}

module attributes {stable_mosaic.version = 11 : i64} {
  func.func @_layer_kernel(%arg0: i32, %arg1: memref<16x128xf32, #tpu.memory_space<vmem>>, %arg2: memref<1x1x16xf32, #tpu.memory_space<vmem>>, %arg3: memref<128x384xbf16, #tpu.memory_space<vmem>>, %arg4: memref<1x384xf32, #tpu.memory_space<vmem>>, %arg5: memref<128x128xbf16, #tpu.memory_space<vmem>>, %arg6: memref<1x128xf32, #tpu.memory_space<vmem>>, %arg7: memref<1x128xf32, #tpu.memory_space<vmem>>, %arg8: memref<1x128xf32, #tpu.memory_space<vmem>>, %arg9: memref<128x512xbf16, #tpu.memory_space<vmem>>, %arg10: memref<1x512xf32, #tpu.memory_space<vmem>>, %arg11: memref<512x128xbf16, #tpu.memory_space<vmem>>, %arg12: memref<1x128xf32, #tpu.memory_space<vmem>>, %arg13: memref<1x128xf32, #tpu.memory_space<vmem>>, %arg14: memref<1x128xf32, #tpu.memory_space<vmem>>, %arg15: memref<16x128xf32, #tpu.memory_space<vmem>>) attributes {dimension_semantics = [#tpu.dimension_semantics<parallel>], iteration_bounds = array<i64: 2>, scalar_prefetch = 0 : i64, scratch_operands = 0 : i64, tpu.core_type = #tpu.core_type<tc>, window_params = [{transform_indices = @transform_0, window_bounds = array<i64: 16, 128>}, {transform_indices = @transform_1, window_bounds = array<i64: 1, 1, 16>}, {pipeline_mode = #tpu.pipeline_mode<synchronous>, transform_indices = @transform_2, window_bounds = array<i64: 128, 384>}, {pipeline_mode = #tpu.pipeline_mode<synchronous>, transform_indices = @transform_3, window_bounds = array<i64: 1, 384>}, {pipeline_mode = #tpu.pipeline_mode<synchronous>, transform_indices = @transform_4, window_bounds = array<i64: 128, 128>}, {pipeline_mode = #tpu.pipeline_mode<synchronous>, transform_indices = @transform_5, window_bounds = array<i64: 1, 128>}, {pipeline_mode = #tpu.pipeline_mode<synchronous>, transform_indices = @transform_6, window_bounds = array<i64: 1, 128>}, {pipeline_mode = #tpu.pipeline_mode<synchronous>, transform_indices = @transform_7, window_bounds = array<i64: 1, 128>}, {pipeline_mode = #tpu.pipeline_mode<synchronous>, transform_indices = @transform_8, window_bounds = array<i64: 128, 512>}, {pipeline_mode = #tpu.pipeline_mode<synchronous>, transform_indices = @transform_9, window_bounds = array<i64: 1, 512>}, {pipeline_mode = #tpu.pipeline_mode<synchronous>, transform_indices = @transform_10, window_bounds = array<i64: 512, 128>}, {pipeline_mode = #tpu.pipeline_mode<synchronous>, transform_indices = @transform_11, window_bounds = array<i64: 1, 128>}, {pipeline_mode = #tpu.pipeline_mode<synchronous>, transform_indices = @transform_12, window_bounds = array<i64: 1, 128>}, {pipeline_mode = #tpu.pipeline_mode<synchronous>, transform_indices = @transform_13, window_bounds = array<i64: 1, 128>}, {transform_indices = @transform_14, window_bounds = array<i64: 16, 128>}]} {
    %c0 = arith.constant 0 : index
    %c0_0 = arith.constant 0 : index
    %0 = vector.load %arg1[%c0, %c0_0] : memref<16x128xf32, #tpu.memory_space<vmem>>, vector<16x128xf32>
    %1 = arith.truncf %0 : vector<16x128xf32> to vector<16x128xbf16>
    %c0_1 = arith.constant 0 : index
    %c0_2 = arith.constant 0 : index
    %2 = vector.load %arg3[%c0_1, %c0_2] : memref<128x384xbf16, #tpu.memory_space<vmem>>, vector<128x384xbf16>
    %cst = arith.constant dense<0.000000e+00> : vector<16x384xf32>
    %3 = tpu.matmul %1, %2, %cst {dimension_numbers = #tpu.dot_dimension_numbers<[1], [0], [0], [1], [0, 0, 1, 1], [], []>} : vector<16x128xbf16>, vector<128x384xbf16>, vector<16x384xf32> -> vector<16x384xf32>
    %c0_3 = arith.constant 0 : index
    %c0_4 = arith.constant 0 : index
    %4 = vector.load %arg4[%c0_3, %c0_4] : memref<1x384xf32, #tpu.memory_space<vmem>>, vector<1x384xf32>
    %5 = vector.broadcast %4 : vector<1x384xf32> to vector<16x384xf32>
    %6 = arith.addf %3, %5 : vector<16x384xf32>
    %7 = vector.extract_strided_slice %6 {offsets = [0, 0], sizes = [16, 128], strides = [1, 1]} : vector<16x384xf32> to vector<16x128xf32>
    %8 = vector.extract_strided_slice %6 {offsets = [0, 128], sizes = [16, 128], strides = [1, 1]} : vector<16x384xf32> to vector<16x128xf32>
    %9 = vector.extract_strided_slice %6 {offsets = [0, 256], sizes = [16, 128], strides = [1, 1]} : vector<16x384xf32> to vector<16x128xf32>
    %c0_5 = arith.constant 0 : index
    %c0_6 = arith.constant 0 : index
    %c0_7 = arith.constant 0 : index
    %10 = vector.load %arg2[%c0_5, %c0_6, %c0_7] : memref<1x1x16xf32, #tpu.memory_space<vmem>>, vector<1x1x16xf32>
    %11 = vector.shape_cast %10 : vector<1x1x16xf32> to vector<1x16xf32>
    %12 = vector.extract_strided_slice %7 {offsets = [0, 0], sizes = [16, 32], strides = [1, 1]} : vector<16x128xf32> to vector<16x32xf32>
    %13 = vector.extract_strided_slice %8 {offsets = [0, 0], sizes = [16, 32], strides = [1, 1]} : vector<16x128xf32> to vector<16x32xf32>
    %14 = vector.extract_strided_slice %9 {offsets = [0, 0], sizes = [16, 32], strides = [1, 1]} : vector<16x128xf32> to vector<16x32xf32>
    %cst_8 = arith.constant dense<0.000000e+00> : vector<16x16xf32>
    %15 = tpu.matmul %12, %13, %cst_8 {dimension_numbers = #tpu.dot_dimension_numbers<[1], [1], [0], [0], [0, 0, 1, 0], [], []>} : vector<16x32xf32>, vector<16x32xf32>, vector<16x16xf32> -> vector<16x16xf32>
    %cst_9 = arith.constant 0.176776692 : f32
    %16 = vector.broadcast %cst_9 : f32 to vector<16x16xf32>
    %17 = arith.mulf %15, %16 : vector<16x16xf32>
    %18 = vector.broadcast %11 : vector<1x16xf32> to vector<16x16xf32>
    %19 = arith.addf %17, %18 : vector<16x16xf32>
    %cst_10 = arith.constant dense<0xFF800000> : vector<16xf32>
    %20 = vector.multi_reduction <maximumf>, %19, %cst_10 [1] : vector<16x16xf32> to vector<16xf32>
    %21 = vector.shape_cast %20 : vector<16xf32> to vector<16x1xf32>
    %22 = vector.broadcast %21 : vector<16x1xf32> to vector<16x16xf32>
    %23 = arith.subf %19, %22 : vector<16x16xf32>
    %24 = math.exp %23 : vector<16x16xf32>
    %cst_11 = arith.constant dense<0.000000e+00> : vector<16xf32>
    %25 = vector.multi_reduction <add>, %24, %cst_11 [1] : vector<16x16xf32> to vector<16xf32>
    %26 = vector.shape_cast %25 : vector<16xf32> to vector<16x1xf32>
    %27 = tpu.reciprocal %26 {approx = true} : vector<16x1xf32> -> vector<16x1xf32>
    %28 = vector.broadcast %27 : vector<16x1xf32> to vector<16x16xf32>
    %29 = arith.mulf %24, %28 : vector<16x16xf32>
    %cst_12 = arith.constant dense<0.000000e+00> : vector<16x32xf32>
    %30 = tpu.matmul %29, %14, %cst_12 {dimension_numbers = #tpu.dot_dimension_numbers<[1], [0], [0], [1], [0, 0, 1, 1], [], []>} : vector<16x16xf32>, vector<16x32xf32>, vector<16x32xf32> -> vector<16x32xf32>
    %31 = vector.extract_strided_slice %7 {offsets = [0, 32], sizes = [16, 32], strides = [1, 1]} : vector<16x128xf32> to vector<16x32xf32>
    %32 = vector.extract_strided_slice %8 {offsets = [0, 32], sizes = [16, 32], strides = [1, 1]} : vector<16x128xf32> to vector<16x32xf32>
    %33 = vector.extract_strided_slice %9 {offsets = [0, 32], sizes = [16, 32], strides = [1, 1]} : vector<16x128xf32> to vector<16x32xf32>
    %cst_13 = arith.constant dense<0.000000e+00> : vector<16x16xf32>
    %34 = tpu.matmul %31, %32, %cst_13 {dimension_numbers = #tpu.dot_dimension_numbers<[1], [1], [0], [0], [0, 0, 1, 0], [], []>} : vector<16x32xf32>, vector<16x32xf32>, vector<16x16xf32> -> vector<16x16xf32>
    %cst_14 = arith.constant 0.176776692 : f32
    %35 = vector.broadcast %cst_14 : f32 to vector<16x16xf32>
    %36 = arith.mulf %34, %35 : vector<16x16xf32>
    %37 = vector.broadcast %11 : vector<1x16xf32> to vector<16x16xf32>
    %38 = arith.addf %36, %37 : vector<16x16xf32>
    %cst_15 = arith.constant dense<0xFF800000> : vector<16xf32>
    %39 = vector.multi_reduction <maximumf>, %38, %cst_15 [1] : vector<16x16xf32> to vector<16xf32>
    %40 = vector.shape_cast %39 : vector<16xf32> to vector<16x1xf32>
    %41 = vector.broadcast %40 : vector<16x1xf32> to vector<16x16xf32>
    %42 = arith.subf %38, %41 : vector<16x16xf32>
    %43 = math.exp %42 : vector<16x16xf32>
    %cst_16 = arith.constant dense<0.000000e+00> : vector<16xf32>
    %44 = vector.multi_reduction <add>, %43, %cst_16 [1] : vector<16x16xf32> to vector<16xf32>
    %45 = vector.shape_cast %44 : vector<16xf32> to vector<16x1xf32>
    %46 = tpu.reciprocal %45 {approx = true} : vector<16x1xf32> -> vector<16x1xf32>
    %47 = vector.broadcast %46 : vector<16x1xf32> to vector<16x16xf32>
    %48 = arith.mulf %43, %47 : vector<16x16xf32>
    %cst_17 = arith.constant dense<0.000000e+00> : vector<16x32xf32>
    %49 = tpu.matmul %48, %33, %cst_17 {dimension_numbers = #tpu.dot_dimension_numbers<[1], [0], [0], [1], [0, 0, 1, 1], [], []>} : vector<16x16xf32>, vector<16x32xf32>, vector<16x32xf32> -> vector<16x32xf32>
    %50 = vector.extract_strided_slice %7 {offsets = [0, 64], sizes = [16, 32], strides = [1, 1]} : vector<16x128xf32> to vector<16x32xf32>
    %51 = vector.extract_strided_slice %8 {offsets = [0, 64], sizes = [16, 32], strides = [1, 1]} : vector<16x128xf32> to vector<16x32xf32>
    %52 = vector.extract_strided_slice %9 {offsets = [0, 64], sizes = [16, 32], strides = [1, 1]} : vector<16x128xf32> to vector<16x32xf32>
    %cst_18 = arith.constant dense<0.000000e+00> : vector<16x16xf32>
    %53 = tpu.matmul %50, %51, %cst_18 {dimension_numbers = #tpu.dot_dimension_numbers<[1], [1], [0], [0], [0, 0, 1, 0], [], []>} : vector<16x32xf32>, vector<16x32xf32>, vector<16x16xf32> -> vector<16x16xf32>
    %cst_19 = arith.constant 0.176776692 : f32
    %54 = vector.broadcast %cst_19 : f32 to vector<16x16xf32>
    %55 = arith.mulf %53, %54 : vector<16x16xf32>
    %56 = vector.broadcast %11 : vector<1x16xf32> to vector<16x16xf32>
    %57 = arith.addf %55, %56 : vector<16x16xf32>
    %cst_20 = arith.constant dense<0xFF800000> : vector<16xf32>
    %58 = vector.multi_reduction <maximumf>, %57, %cst_20 [1] : vector<16x16xf32> to vector<16xf32>
    %59 = vector.shape_cast %58 : vector<16xf32> to vector<16x1xf32>
    %60 = vector.broadcast %59 : vector<16x1xf32> to vector<16x16xf32>
    %61 = arith.subf %57, %60 : vector<16x16xf32>
    %62 = math.exp %61 : vector<16x16xf32>
    %cst_21 = arith.constant dense<0.000000e+00> : vector<16xf32>
    %63 = vector.multi_reduction <add>, %62, %cst_21 [1] : vector<16x16xf32> to vector<16xf32>
    %64 = vector.shape_cast %63 : vector<16xf32> to vector<16x1xf32>
    %65 = tpu.reciprocal %64 {approx = true} : vector<16x1xf32> -> vector<16x1xf32>
    %66 = vector.broadcast %65 : vector<16x1xf32> to vector<16x16xf32>
    %67 = arith.mulf %62, %66 : vector<16x16xf32>
    %cst_22 = arith.constant dense<0.000000e+00> : vector<16x32xf32>
    %68 = tpu.matmul %67, %52, %cst_22 {dimension_numbers = #tpu.dot_dimension_numbers<[1], [0], [0], [1], [0, 0, 1, 1], [], []>} : vector<16x16xf32>, vector<16x32xf32>, vector<16x32xf32> -> vector<16x32xf32>
    %69 = vector.extract_strided_slice %7 {offsets = [0, 96], sizes = [16, 32], strides = [1, 1]} : vector<16x128xf32> to vector<16x32xf32>
    %70 = vector.extract_strided_slice %8 {offsets = [0, 96], sizes = [16, 32], strides = [1, 1]} : vector<16x128xf32> to vector<16x32xf32>
    %71 = vector.extract_strided_slice %9 {offsets = [0, 96], sizes = [16, 32], strides = [1, 1]} : vector<16x128xf32> to vector<16x32xf32>
    %cst_23 = arith.constant dense<0.000000e+00> : vector<16x16xf32>
    %72 = tpu.matmul %69, %70, %cst_23 {dimension_numbers = #tpu.dot_dimension_numbers<[1], [1], [0], [0], [0, 0, 1, 0], [], []>} : vector<16x32xf32>, vector<16x32xf32>, vector<16x16xf32> -> vector<16x16xf32>
    %cst_24 = arith.constant 0.176776692 : f32
    %73 = vector.broadcast %cst_24 : f32 to vector<16x16xf32>
    %74 = arith.mulf %72, %73 : vector<16x16xf32>
    %75 = vector.broadcast %11 : vector<1x16xf32> to vector<16x16xf32>
    %76 = arith.addf %74, %75 : vector<16x16xf32>
    %cst_25 = arith.constant dense<0xFF800000> : vector<16xf32>
    %77 = vector.multi_reduction <maximumf>, %76, %cst_25 [1] : vector<16x16xf32> to vector<16xf32>
    %78 = vector.shape_cast %77 : vector<16xf32> to vector<16x1xf32>
    %79 = vector.broadcast %78 : vector<16x1xf32> to vector<16x16xf32>
    %80 = arith.subf %76, %79 : vector<16x16xf32>
    %81 = math.exp %80 : vector<16x16xf32>
    %cst_26 = arith.constant dense<0.000000e+00> : vector<16xf32>
    %82 = vector.multi_reduction <add>, %81, %cst_26 [1] : vector<16x16xf32> to vector<16xf32>
    %83 = vector.shape_cast %82 : vector<16xf32> to vector<16x1xf32>
    %84 = tpu.reciprocal %83 {approx = true} : vector<16x1xf32> -> vector<16x1xf32>
    %85 = vector.broadcast %84 : vector<16x1xf32> to vector<16x16xf32>
    %86 = arith.mulf %81, %85 : vector<16x16xf32>
    %cst_27 = arith.constant dense<0.000000e+00> : vector<16x32xf32>
    %87 = tpu.matmul %86, %71, %cst_27 {dimension_numbers = #tpu.dot_dimension_numbers<[1], [0], [0], [1], [0, 0, 1, 1], [], []>} : vector<16x16xf32>, vector<16x32xf32>, vector<16x32xf32> -> vector<16x32xf32>
    %88 = tpu.concatenate %30, %49, %68, %87 in 1 : vector<16x32xf32>, vector<16x32xf32>, vector<16x32xf32>, vector<16x32xf32> -> vector<16x128xf32>
    %89 = arith.truncf %88 : vector<16x128xf32> to vector<16x128xbf16>
    %c0_28 = arith.constant 0 : index
    %c0_29 = arith.constant 0 : index
    %90 = vector.load %arg5[%c0_28, %c0_29] : memref<128x128xbf16, #tpu.memory_space<vmem>>, vector<128x128xbf16>
    %cst_30 = arith.constant dense<0.000000e+00> : vector<16x128xf32>
    %91 = tpu.matmul %89, %90, %cst_30 {dimension_numbers = #tpu.dot_dimension_numbers<[1], [0], [0], [1], [0, 0, 1, 1], [], []>} : vector<16x128xbf16>, vector<128x128xbf16>, vector<16x128xf32> -> vector<16x128xf32>
    %c0_31 = arith.constant 0 : index
    %c0_32 = arith.constant 0 : index
    %92 = vector.load %arg6[%c0_31, %c0_32] : memref<1x128xf32, #tpu.memory_space<vmem>>, vector<1x128xf32>
    %93 = vector.broadcast %92 : vector<1x128xf32> to vector<16x128xf32>
    %94 = arith.addf %91, %93 : vector<16x128xf32>
    %95 = arith.addf %94, %0 : vector<16x128xf32>
    %c0_33 = arith.constant 0 : index
    %c0_34 = arith.constant 0 : index
    %96 = vector.load %arg7[%c0_33, %c0_34] : memref<1x128xf32, #tpu.memory_space<vmem>>, vector<1x128xf32>
    %c0_35 = arith.constant 0 : index
    %c0_36 = arith.constant 0 : index
    %97 = vector.load %arg8[%c0_35, %c0_36] : memref<1x128xf32, #tpu.memory_space<vmem>>, vector<1x128xf32>
    %cst_37 = arith.constant dense<0.000000e+00> : vector<16xf32>
    %98 = vector.multi_reduction <add>, %95, %cst_37 [1] : vector<16x128xf32> to vector<16xf32>
    %99 = vector.shape_cast %98 : vector<16xf32> to vector<16x1xf32>
    %cst_38 = arith.constant 1.280000e+02 : f32
    %100 = vector.broadcast %cst_38 : f32 to vector<16x1xf32>
    %101 = arith.divf %99, %100 : vector<16x1xf32>
    %102 = vector.broadcast %101 : vector<16x1xf32> to vector<16x128xf32>
    %103 = arith.subf %95, %102 : vector<16x128xf32>
    %104 = arith.mulf %103, %103 : vector<16x128xf32>
    %cst_39 = arith.constant dense<0.000000e+00> : vector<16xf32>
    %105 = vector.multi_reduction <add>, %104, %cst_39 [1] : vector<16x128xf32> to vector<16xf32>
    %106 = vector.shape_cast %105 : vector<16xf32> to vector<16x1xf32>
    %cst_40 = arith.constant 1.280000e+02 : f32
    %107 = vector.broadcast %cst_40 : f32 to vector<16x1xf32>
    %108 = arith.divf %106, %107 : vector<16x1xf32>
    %cst_41 = arith.constant 9.99999996E-13 : f32
    %109 = vector.broadcast %cst_41 : f32 to vector<16x1xf32>
    %110 = arith.addf %108, %109 : vector<16x1xf32>
    %111 = math.rsqrt %110 : vector<16x1xf32>
    %112 = vector.broadcast %111 : vector<16x1xf32> to vector<16x128xf32>
    %113 = arith.mulf %103, %112 : vector<16x128xf32>
    %114 = vector.broadcast %96 : vector<1x128xf32> to vector<16x128xf32>
    %115 = arith.mulf %113, %114 : vector<16x128xf32>
    %116 = vector.broadcast %97 : vector<1x128xf32> to vector<16x128xf32>
    %117 = arith.addf %115, %116 : vector<16x128xf32>
    %118 = arith.truncf %117 : vector<16x128xf32> to vector<16x128xbf16>
    %c0_42 = arith.constant 0 : index
    %c0_43 = arith.constant 0 : index
    %119 = vector.load %arg9[%c0_42, %c0_43] : memref<128x512xbf16, #tpu.memory_space<vmem>>, vector<128x512xbf16>
    %cst_44 = arith.constant dense<0.000000e+00> : vector<16x512xf32>
    %120 = tpu.matmul %118, %119, %cst_44 {dimension_numbers = #tpu.dot_dimension_numbers<[1], [0], [0], [1], [0, 0, 1, 1], [], []>} : vector<16x128xbf16>, vector<128x512xbf16>, vector<16x512xf32> -> vector<16x512xf32>
    %c0_45 = arith.constant 0 : index
    %c0_46 = arith.constant 0 : index
    %121 = vector.load %arg10[%c0_45, %c0_46] : memref<1x512xf32, #tpu.memory_space<vmem>>, vector<1x512xf32>
    %122 = vector.broadcast %121 : vector<1x512xf32> to vector<16x512xf32>
    %123 = arith.addf %120, %122 : vector<16x512xf32>
    %cst_47 = arith.constant 5.000000e-01 : f32
    %124 = vector.broadcast %cst_47 : f32 to vector<16x512xf32>
    %125 = arith.mulf %124, %123 : vector<16x512xf32>
    %cst_48 = arith.constant 4.471500e-02 : f32
    %126 = vector.broadcast %cst_48 : f32 to vector<16x512xf32>
    %127 = arith.mulf %126, %123 : vector<16x512xf32>
    %128 = arith.mulf %127, %123 : vector<16x512xf32>
    %129 = arith.mulf %128, %123 : vector<16x512xf32>
    %130 = arith.addf %123, %129 : vector<16x512xf32>
    %cst_49 = arith.constant 0.797884583 : f32
    %131 = vector.broadcast %cst_49 : f32 to vector<16x512xf32>
    %132 = arith.mulf %131, %130 : vector<16x512xf32>
    %133 = math.tanh %132 : vector<16x512xf32>
    %cst_50 = arith.constant 1.000000e+00 : f32
    %134 = vector.broadcast %cst_50 : f32 to vector<16x512xf32>
    %135 = arith.addf %134, %133 : vector<16x512xf32>
    %136 = arith.mulf %125, %135 : vector<16x512xf32>
    %137 = arith.truncf %136 : vector<16x512xf32> to vector<16x512xbf16>
    %c0_51 = arith.constant 0 : index
    %c0_52 = arith.constant 0 : index
    %138 = vector.load %arg11[%c0_51, %c0_52] : memref<512x128xbf16, #tpu.memory_space<vmem>>, vector<512x128xbf16>
    %cst_53 = arith.constant dense<0.000000e+00> : vector<16x128xf32>
    %139 = tpu.matmul %137, %138, %cst_53 {dimension_numbers = #tpu.dot_dimension_numbers<[1], [0], [0], [1], [0, 0, 1, 1], [], []>} : vector<16x512xbf16>, vector<512x128xbf16>, vector<16x128xf32> -> vector<16x128xf32>
    %c0_54 = arith.constant 0 : index
    %c0_55 = arith.constant 0 : index
    %140 = vector.load %arg12[%c0_54, %c0_55] : memref<1x128xf32, #tpu.memory_space<vmem>>, vector<1x128xf32>
    %141 = vector.broadcast %140 : vector<1x128xf32> to vector<16x128xf32>
    %142 = arith.addf %139, %141 : vector<16x128xf32>
    %143 = arith.addf %142, %117 : vector<16x128xf32>
    %c0_56 = arith.constant 0 : index
    %c0_57 = arith.constant 0 : index
    %144 = vector.load %arg13[%c0_56, %c0_57] : memref<1x128xf32, #tpu.memory_space<vmem>>, vector<1x128xf32>
    %c0_58 = arith.constant 0 : index
    %c0_59 = arith.constant 0 : index
    %145 = vector.load %arg14[%c0_58, %c0_59] : memref<1x128xf32, #tpu.memory_space<vmem>>, vector<1x128xf32>
    %cst_60 = arith.constant dense<0.000000e+00> : vector<16xf32>
    %146 = vector.multi_reduction <add>, %143, %cst_60 [1] : vector<16x128xf32> to vector<16xf32>
    %147 = vector.shape_cast %146 : vector<16xf32> to vector<16x1xf32>
    %cst_61 = arith.constant 1.280000e+02 : f32
    %148 = vector.broadcast %cst_61 : f32 to vector<16x1xf32>
    %149 = arith.divf %147, %148 : vector<16x1xf32>
    %150 = vector.broadcast %149 : vector<16x1xf32> to vector<16x128xf32>
    %151 = arith.subf %143, %150 : vector<16x128xf32>
    %152 = arith.mulf %151, %151 : vector<16x128xf32>
    %cst_62 = arith.constant dense<0.000000e+00> : vector<16xf32>
    %153 = vector.multi_reduction <add>, %152, %cst_62 [1] : vector<16x128xf32> to vector<16xf32>
    %154 = vector.shape_cast %153 : vector<16xf32> to vector<16x1xf32>
    %cst_63 = arith.constant 1.280000e+02 : f32
    %155 = vector.broadcast %cst_63 : f32 to vector<16x1xf32>
    %156 = arith.divf %154, %155 : vector<16x1xf32>
    %cst_64 = arith.constant 9.99999996E-13 : f32
    %157 = vector.broadcast %cst_64 : f32 to vector<16x1xf32>
    %158 = arith.addf %156, %157 : vector<16x1xf32>
    %159 = math.rsqrt %158 : vector<16x1xf32>
    %160 = vector.broadcast %159 : vector<16x1xf32> to vector<16x128xf32>
    %161 = arith.mulf %151, %160 : vector<16x128xf32>
    %162 = vector.broadcast %144 : vector<1x128xf32> to vector<16x128xf32>
    %163 = arith.mulf %161, %162 : vector<16x128xf32>
    %164 = vector.broadcast %145 : vector<1x128xf32> to vector<16x128xf32>
    %165 = arith.addf %163, %164 : vector<16x128xf32>
    %c0_65 = arith.constant 0 : index
    %c0_66 = arith.constant 0 : index
    %166 = vector.load %arg15[%c0_65, %c0_66] : memref<16x128xf32, #tpu.memory_space<vmem>>, vector<16x128xf32>
    tpu.vector_store %arg15[%c0_65, %c0_66], %165 {strides = array<i32>} : memref<16x128xf32, #tpu.memory_space<vmem>>, vector<16x128xf32>,
    return
  }
  func.func @transform_0(%arg0: i32) -> (i32, i32) {
    %c0_i32 = arith.constant 0 : i32
    %c0_i32_0 = arith.constant 0 : i32
    return %arg0, %c0_i32 : i32, i32
  }
  func.func @transform_1(%arg0: i32) -> (i32, i32, i32) {
    %c0_i32 = arith.constant 0 : i32
    %c0_i32_0 = arith.constant 0 : i32
    %c0_i32_1 = arith.constant 0 : i32
    return %arg0, %c0_i32, %c0_i32_0 : i32, i32, i32
  }
  func.func @transform_2(%arg0: i32) -> (i32, i32) {
    %c0_i32 = arith.constant 0 : i32
    %c0_i32_0 = arith.constant 0 : i32
    %c0_i32_1 = arith.constant 0 : i32
    return %c0_i32, %c0_i32_0 : i32, i32
  }
  func.func @transform_3(%arg0: i32) -> (i32, i32) {
    %c0_i32 = arith.constant 0 : i32
    %c0_i32_0 = arith.constant 0 : i32
    %c0_i32_1 = arith.constant 0 : i32
    return %c0_i32, %c0_i32_0 : i32, i32
  }
  func.func @transform_4(%arg0: i32) -> (i32, i32) {
    %c0_i32 = arith.constant 0 : i32
    %c0_i32_0 = arith.constant 0 : i32
    %c0_i32_1 = arith.constant 0 : i32
    return %c0_i32, %c0_i32_0 : i32, i32
  }
  func.func @transform_5(%arg0: i32) -> (i32, i32) {
    %c0_i32 = arith.constant 0 : i32
    %c0_i32_0 = arith.constant 0 : i32
    %c0_i32_1 = arith.constant 0 : i32
    return %c0_i32, %c0_i32_0 : i32, i32
  }
  func.func @transform_6(%arg0: i32) -> (i32, i32) {
    %c0_i32 = arith.constant 0 : i32
    %c0_i32_0 = arith.constant 0 : i32
    %c0_i32_1 = arith.constant 0 : i32
    return %c0_i32, %c0_i32_0 : i32, i32
  }
  func.func @transform_7(%arg0: i32) -> (i32, i32) {
    %c0_i32 = arith.constant 0 : i32
    %c0_i32_0 = arith.constant 0 : i32
    %c0_i32_1 = arith.constant 0 : i32
    return %c0_i32, %c0_i32_0 : i32, i32
  }
  func.func @transform_8(%arg0: i32) -> (i32, i32) {
    %c0_i32 = arith.constant 0 : i32
    %c0_i32_0 = arith.constant 0 : i32
    %c0_i32_1 = arith.constant 0 : i32
    return %c0_i32, %c0_i32_0 : i32, i32
  }
  func.func @transform_9(%arg0: i32) -> (i32, i32) {
    %c0_i32 = arith.constant 0 : i32
    %c0_i32_0 = arith.constant 0 : i32
    %c0_i32_1 = arith.constant 0 : i32
    return %c0_i32, %c0_i32_0 : i32, i32
  }
  func.func @transform_10(%arg0: i32) -> (i32, i32) {
    %c0_i32 = arith.constant 0 : i32
    %c0_i32_0 = arith.constant 0 : i32
    %c0_i32_1 = arith.constant 0 : i32
    return %c0_i32, %c0_i32_0 : i32, i32
  }
  func.func @transform_11(%arg0: i32) -> (i32, i32) {
    %c0_i32 = arith.constant 0 : i32
    %c0_i32_0 = arith.constant 0 : i32
    %c0_i32_1 = arith.constant 0 : i32
    return %c0_i32, %c0_i32_0 : i32, i32
  }
  func.func @transform_12(%arg0: i32) -> (i32, i32) {
    %c0_i32 = arith.constant 0 : i32
    %c0_i32_0 = arith.constant 0 : i32
    %c0_i32_1 = arith.constant 0 : i32
    return %c0_i32, %c0_i32_0 : i32, i32
  }
  func.func @transform_13(%arg0: i32) -> (i32, i32) {
    %c0_i32 = arith.constant 0 : i32
    %c0_i32_0 = arith.constant 0 : i32
    %c0_i32_1 = arith.constant 0 : i32
    return %c0_i32, %c0_i32_0 : i32, i32
  }
  func.func @transform_14(%arg0: i32) -> (i32, i32) {
    %c0_i32 = arith.constant 0 : i32
    %c0_i32_0 = arith.constant 0 : i32
    return %arg0, %c0_i32 : i32, i32
  }
}

</mosaic_0001>

<bundles_post_ra>
// kernel: bert_with_loss_forward.4
= control target key start
LH: loop header
LB: loop body
LE: loop exit
PB: predicated region body
PF: predicated region fallthrough
CT: control target
= control target key end

     0   :  { %s328_s12 = smov 0   ;;  %s358_s0 = inlined_call_operand.vmem [shape: f32[32,128], index: 0, kind: input, shape index: {}]   ;;  %s359_s1 = inlined_call_operand.vmem [shape: f32[1,128], index: 1, kind: input, shape index: {}]   ;;  %s360_s2 = inlined_call_operand.vmem [shape: f32[1,128], index: 2, kind: input, shape index: {}]   ;;  %s361_s3 = inlined_call_operand.vmem [shape: f32[32,128], index: 3, kind: output, shape index: {}]  }
   0x1 LB: > { %s275_s13 = sadd.s32 4294967295, %s306_s12   ;;  %p279_p0 = scmp.ge.s32.totalorder %s306_s12, 1  ;;  %s306_s12 = sphi %s328_s12, %s13_s12  }
   0x2   : > { %p138_p1 = scmp.lt.s32.totalorder %s306_s12, 3 }
   0x4   : > { %p139_p2 = pnand %p279_p0, %p138_p1 }
   0x5   : > { %s280_s14 = sshll.u32 (!%p139_p2), %s275_s13, 1  ;;  %v284_v17 = vld [vmem:[%s359_s1] ss:$0 sm:$0xff] (!%p139_p2) }
   0x6   : > { %142 = sbr.rel (%p139_p2) target bundleno = 333 (0x14d), region = 32  ;;  %p163_p3 = scmp.lt.s32.totalorder (!%p139_p2), %s280_s14, 3  ;;  %v285_v19 = vld [vmem:[%s360_s2] ss:$0 sm:$0xff] (!%p139_p2) }
   0xd   : > { %s363_s14 = smov (!%p163_p3, %s280_s14), 3 }
   0xe   : > { %s281_s15 = sshll.u32 %s363_s14, 3 }
   0xf   : > { %s166_s18 = scalar_lea.vmem %s358_s0, %s281_s15  ;;  %s172_s25 = scalar_lea.vmem %s361_s3, %s281_s15 }
  0x10   : > { %v174_v0 = vld [vmem:[%s166_s18] sm:$0xff]  ;;  %v175_v1 = vld [vmem:[%s166_s18 + $0x8] sm:$0xff] }
  0x11   : > { %178 = vadd.xlane.f32.xlu0 %v174_v0 }
  0x15   : > { %180 = vadd.xlane.f32.xlu0 %v175_v1 }
  0x9e   : > { %v179_v2 = vpop.xlane.xlu0 %178 }
  0x9f   : > { %v183_v3 = vmul.f32 0.0078125, %v179_v2 }
  0xa1   : > { %v185_v4 = vsub.f32 %v174_v0, %v183_v3 }
  0xa2   : > { %v181_v5 = vpop.xlane.xlu0 %180 }
  0xa3   : > { %v184_v6 = vmul.f32 0.0078125, %v181_v5  ;;  %v187_v7 = vmul.f32 %v185_v4, %v185_v4 }
  0xa5   : > { %v186_v8 = vsub.f32 %v175_v1, %v184_v6  ;;  %189 = vadd.xlane.f32.xlu1 %v187_v7 }
  0xa7   : > { %v188_v9 = vmul.f32 %v186_v8, %v186_v8 }
  0xa9   : > { %191 = vadd.xlane.f32.xlu1 %v188_v9 }
 0x132   : > { %v190_v10 = vpop.xlane.xlu1 %189 }
 0x133   : > { %v193_v11 = vmul.f32 0.0078125, %v190_v10 }
 0x135   : > { %v195_v12 = vadd.f32 1e-12, %v193_v11 }
 0x136   : > { %v192_v13 = vpop.xlane.xlu1 %191 }
 0x137   : > { %296 = vrsqrt.f32 %v195_v12  ;;  %v194_v14 = vmul.f32 0.0078125, %v192_v13 }
 0x139   : > { %v196_v15 = vadd.f32 1e-12, %v194_v14 }
 0x13b   : > { %298 = vrsqrt.f32 %v196_v15 }
 0x141   : > { %v297_v16 = vpop.eup %296 }
 0x142   : > { %v199_v18 = vmul.f32 %v297_v16, %v185_v4 }
 0x144   : > { %v207_v20 = vmul.f32 %v284_v17, %v199_v18 }
 0x145   : > { %v299_v21 = vpop.eup %298 }
 0x146   : > { %v215_v22 = vadd.f32 %v285_v19, %v207_v20  ;;  %v200_v23 = vmul.f32 %v299_v21, %v186_v8 }
 0x148   : > { %217 = vst [vmem:[%s172_s25] sm:$0xff] %v215_v22  ;;  %v208_v24 = vmul.f32 %v284_v17, %v200_v23 }
 0x14a   : > { %v216_v25 = vadd.f32 %v285_v19, %v208_v24 }
 0x14c   : > { %218 = vst [vmem:[%s172_s25 + $0x8] sm:$0xff] %v216_v25 }
 0x14d PF: > { %s13_s12 = sadd.s32 1, %s306_s12  }
 0x14e   : > { %p10_p4 = scmp.ge.s32.totalorder %s13_s12, 4  }
 0x150   :  { %12 = sbr.rel (!%p10_p4) target bundleno = 1 (0x1), region = 62 }

// kernel: bert_with_loss_forward.7
= control target key start
LH: loop header
LB: loop body
LE: loop exit
PB: predicated region body
PF: predicated region fallthrough
CT: control target
= control target key end

     0   :  { %13 = vsyncpa [#allocation3], 0  ;;  %v478_v1 = vmov 0.0   ;;  %vm479_vm0 = vmmov 0   ;;  %v480_v3 = vmov 0.0|0.0   ;;  %s643_s0 = inlined_call_operand.vmem [shape: f32[2,128], index: 0, kind: input, shape index: {}]   ;;  %s644_s1 = inlined_call_operand.vmem [shape: bf16[128,128], index: 1, kind: input, shape index: {}]   ;;  %s645_s2 = inlined_call_operand.vmem [shape: f32[1,128], index: 2, kind: input, shape index: {}]   ;;  %s646_s3 = inlined_call_operand.vmem [shape: f32[128,4], index: 3, kind: input, shape index: {}]   ;;  %s647_s4 = inlined_call_operand.vmem [shape: f32[1,4], index: 4, kind: input, shape index: {}]   ;;  %s648_s5 = inlined_call_operand.vmem [shape: f32[2,4], index: 5, kind: input, shape index: {}]   ;;  %s649_s6 = inlined_call_operand.hbm [shape: f32[2,4], index: 6, kind: output, shape index: {0}]   ;;  %s650_s7 = inlined_call_operand.hbm [shape: f32[1,1], index: 7, kind: output, shape index: {1}]  }
   0x1   :  { %v416_v0 = vld [vmem:[%s644_s1] sm:$0xff]   ;;  %332 = vmatprep.subr.bf16.mxu0 %v478_v1  ;;  %v417_v2 = vld [vmem:[%s644_s1 + $0x8] sm:$0xff]   ;;  %348 = vmatprep.mubr.msk.bf16.mxu0 %vm479_vm0, %v478_v1  ;;  %v418_v4 = vld [vmem:[%s644_s1 + $0x10] sm:$0xff]  }
   0x2   :  { %333 = vmatpush3.bf16.msra.mxu0 %v416_v0  ;;  %387 = vmatprep.subr.bf16.mxu1 %v480_v3  ;;  %v142_v5 = vld [vmem:[%s646_s3] sm:$0xff]  ;;  %v143_v6 = vld [vmem:[%s646_s3 + $0x8] sm:$0xff]  ;;  %v144_v8 = vld [vmem:[%s646_s3 + $0x10] sm:$0xff] }
   0x3   :  { %334 = vmatprep.subr.bf16.mxu0 %v478_v1  ;;  %384 = vmatprep.mubr.msk.f32.mxu1 %vm479_vm0, %v478_v1  ;;  %v388_v7 = vpack.c.bf16 %v143_v6, %v142_v5  ;;  %v145_v9 = vld [vmem:[%s646_s3 + $0x18] sm:$0xff]  ;;  %v146_v12 = vld [vmem:[%s646_s3 + $0x20] sm:$0xff]  ;;  %v147_v13 = vld [vmem:[%s646_s3 + $0x28] sm:$0xff] }
   0x4   :  { %v419_v10 = vld [vmem:[%s644_s1 + $0x18] sm:$0xff]   ;;  %v391_v11 = vpack.c.bf16 %v145_v9, %v144_v8 }
   0x5   :  { %389 = vmatpush3.bf16.msra.mxu1 %v388_v7 }
   0x6   :  { %335 = vmatpush3.bf16.msra.mxu0 %v417_v2  ;;  %390 = vmatprep.subr.bf16.mxu1 %v480_v3 }
   0x7   :  { %336 = vmatprep.subr.bf16.mxu0 %v478_v1 }
   0xa   :  { %337 = vmatpush3.bf16.msra.mxu0 %v418_v4 }
   0xb   :  { %338 = vmatprep.subr.bf16.mxu0 %v478_v1 }
   0xc   :  { %14 = vsyncpa [#allocation5], 0  ;;  %v420_v14 = vld [vmem:[%s644_s1 + $0x20] sm:$0xff]   ;;  %392 = vmatpush3.bf16.msra.mxu1 %v391_v11  ;;  %v394_v15 = vpack.c.bf16 %v147_v13, %v146_v12  ;;  %v148_v16 = vld [vmem:[%s646_s3 + $0x30] sm:$0xff]  ;;  %vm235_vm1 = vcmask 25600  }
   0xd   :  { %393 = vmatprep.subr.bf16.mxu1 %v480_v3  ;;  %v149_v17 = vld [vmem:[%s646_s3 + $0x38] sm:$0xff]  ;;  %v421_v18 = vld [vmem:[%s644_s1 + $0x28] sm:$0xff]   ;;  %v150_v20 = vld [vmem:[%s646_s3 + $0x40] sm:$0xff] }
   0xe   :  { %339 = vmatpush3.bf16.msra.mxu0 %v419_v10  ;;  %v397_v19 = vpack.c.bf16 %v149_v17, %v148_v16  ;;  %v151_v21 = vld [vmem:[%s646_s3 + $0x48] sm:$0xff]  ;;  %v422_v22 = vld [vmem:[%s644_s1 + $0x30] sm:$0xff]   ;;  %v423_v24 = vld [vmem:[%s644_s1 + $0x38] sm:$0xff]  }
   0xf   :  { %340 = vmatprep.subr.bf16.mxu0 %v478_v1  ;;  %v400_v23 = vpack.c.bf16 %v151_v21, %v150_v20  ;;  %v28_v25 = vld [vmem:[%s643_s0] sm:$0x3]  ;;  %v152_v27 = vld [vmem:[%s646_s3 + $0x50] sm:$0xff]  ;;  %v153_v28 = vld [vmem:[%s646_s3 + $0x58] sm:$0xff] }
  0x10   :  { %395 = vmatpush3.bf16.msra.mxu1 %v394_v15  ;;  %v29_v26 = vpack.c.bf16 %v28_v25, %v28_v25  ;;  %v403_v29 = vpack.c.bf16 %v153_v28, %v152_v27  ;;  %v154_v30 = vld [vmem:[%s646_s3 + $0x60] sm:$0xff]  ;;  %v155_v31 = vld [vmem:[%s646_s3 + $0x68] sm:$0xff]  ;;  %v156_v33 = vld [vmem:[%s646_s3 + $0x70] sm:$0xff] }
  0x11   :  { %396 = vmatprep.subr.bf16.mxu1 %v480_v3  ;;  %v406_v32 = vpack.c.bf16 %v155_v31, %v154_v30  ;;  %v157_v34 = vld [vmem:[%s646_s3 + $0x78] sm:$0xff]  ;;  %v296_v36 = vld [vmem:[%s645_s2] ss:$0 sm:$0xff] }
  0x12   :  { %341 = vmatpush3.bf16.msra.mxu0 %v420_v14  ;;  %v409_v35 = vpack.c.bf16 %v157_v34, %v156_v33  ;;  %v305_v43 = vld [vmem:[%s647_s4] ss:$0 sm:$0xff]  ;;  %s481_s4 = smov [#allocation2]  }
  0x13   :  { %342 = vmatprep.subr.bf16.mxu0 %v478_v1  ;;  %v249_v57 = vld [vmem:[%s648_s5] sm:$0x3]  ;;  %s274_s30 = sshll.u32 %s481_s4, 4  ;;  %s275_s30 = int_to_ptr.vmem [resolvable:$true] %s274_s30 }
  0x14   :  { %398 = vmatpush3.bf16.msra.mxu1 %v397_v19  ;;  %s430_s8 = scalar_lea.vmem %s275_s30, 32  ;;  %p435_p1 = scmp.lt.s32.totalorder %s275_s30, %s275_s30 }
  0x15   :  { %399 = vmatprep.subr.bf16.mxu1 %v480_v3  ;;  %p431_p0 = scmp.ne.s32.totalorder %s275_s30, %s430_s8  ;;  %p436_p2 = scmp.lt.s32.totalorder %s430_s8, %s430_s8 }
  0x16   :  { %343 = vmatpush3.bf16.msra.mxu0 %v421_v18 }
  0x17   :  { %344 = vmatprep.subr.bf16.mxu0 %v478_v1  ;;  %p437_p3 = por %p436_p2, %p435_p1 }
  0x18   :  { %401 = vmatpush3.bf16.msra.mxu1 %v400_v23 }
  0x19   :  { %402 = vmatprep.subr.bf16.mxu1 %v480_v3  ;;  %p438_p4 = pnand %p437_p3, %p431_p0 }
  0x1a   :  { %345 = vmatpush3.bf16.msra.mxu0 %v422_v22 }
  0x1b   :  { %346 = vmatprep.subr.bf16.mxu0 %v478_v1 }
  0x1c   :  { %404 = vmatpush3.bf16.msra.mxu1 %v403_v29 }
  0x1d   :  { %405 = vmatprep.subr.bf16.mxu1 %v480_v3 }
  0x1e   :  { %347 = vmatpush3.bf16.msra.mxu0 %v423_v24 }
  0x20   :  { %407 = vmatpush3.bf16.msra.mxu1 %v406_v32 }
  0x21   :  { %349 = vmatmul.mubr.bf16.vlgmr.msra.gmra.mrb[0].mxu0 %v29_v26  ;;  %408 = vmatprep.subr.bf16.mxu1 %v480_v3 }
  0x24   :  { %410 = vmatpush3.bf16.msra.mxu1 %v409_v35 }
  0xf4   :  { %v135_v37 = vpop.f32.mrb[0].mxu0 }
  0xf5   :  { %v136_v38 = vadd.f32 %v296_v36, %v135_v37  ;;  %v350_v39 = vpop.f32.mrb[1].mxu0 }
  0xf6   :  { %v138_v40 = vpop.f32.mrb[2].mxu0 }
  0xf7   :  { %424 = vtanh.f32 %v136_v38  ;;  %v351_v41 = vpop.f32.mrb[3].mxu0 }
 0x101   :  { %v425_v42 = vpop.eup %424 }
 0x102   :  { %385 = vmatmul.mubr.f32.vlgmr.msra.gmra.mrb[0].mxu1 %v425_v42 }
 0x1d5   :  { %v231_v44 = vpop.f32.mrb[0].mxu1 }
 0x1d6   :  { %v232_v45 = vadd.f32 %v305_v43, %v231_v44  ;;  %v386_v46 = vpop.f32.mrb[1].mxu1 }
 0x1d8   :  { %v237_v47 = vsel %vm235_vm1, %v232_v45, -inf  ;;  %236 = vst.msk [vmem:[#allocation2] sm:$0x3] %vm235_vm1, %v232_v45 }
 0x1d9   :  { %238 = vmax.xlane.f32.xlu0 %v237_v47 }
 0x266   :  { %v239_v48 = vpop.xlane.xlu0 %238 }
 0x267   :  { %v240_v49 = vsub.f32 %v232_v45, %v239_v48 }
 0x269   :  { %v241_v50 = vmul.f32 1.442695, %v240_v49 }
 0x26b   :  { %426 = vpow2.f32 %v241_v50 }
 0x275   :  { %v427_v51 = vpop.eup %426 }
 0x276   :  { %v243_v52 = vsel %vm235_vm1, %v427_v51, 0.0 }
 0x277   :  { %244 = vadd.xlane.f32.xlu0 %v243_v52 }
 0x304   :  { %v245_v53 = vpop.xlane.xlu0 %244 }
 0x305   :  { %428 = vlog2.f32 %v245_v53 }
 0x30f   :  { %v429_v54 = vpop.eup %428 }
 0x310   :  { %v247_v55 = vmul.f32 0.6931472, %v429_v54 }
 0x312   :  { %v248_v56 = vadd.f32 %v247_v55, %v239_v48 }
 0x314   :  { %v250_v58 = vsub.f32 %v232_v45, %v248_v56 }
 0x316   :  { %v251_v59 = vmul.f32 %v250_v58, %v249_v57 }
 0x318   :  { %v252_v60 = vsel %vm235_vm1, %v251_v59, 0.0 }
 0x319   :  { %253 = vadd.xlane.f32.xlu1 %v252_v60 }
 0x31a   :  { %441 = shalt.err (!%p438_p4)
}
 0x31b   :  { %s442_s11 = scalar_lea.hbm %s649_s6, 32 }
 0x31c   :  { %p443_p5 = scmp.ne.s32.totalorder %s649_s6, %s442_s11  ;;  %p446_p6 = scmp.lt.u32.totalorder %s442_s11, %s649_s6 }
 0x31e   :  { %p448_p7 = pnand %p446_p6, %p443_p5 }
 0x320   :  { %451 = shalt.err (!%p448_p7)
}
 0x321   :  { %277 = dma.vmem_to_hbm [thread:$0]  %s275_s30, 32, %s649_s6, [#allocation3]   ;;  %vm256_vm2 = vcmask 1041408   ;;  %vm266_vm3 = vcmask 0  }
 0x322   :  { %s482_s17 = smov [#allocation4]  }
 0x323   :  { %s284_s18 = sshll.u32 %s482_s17, 4  ;;  %s285_s18 = int_to_ptr.vmem [resolvable:$true] %s284_s18 }
 0x324   :  { %s452_s19 = scalar_lea.vmem %s285_s18, 16  ;;  %s456_s1 = scalar_lea.vmem %s285_s18, 32 }
 0x325   :  { %p453_p8 = scmp.ne.s32.totalorder %s285_s18, %s452_s19  ;;  %p457_p9 = scmp.lt.s32.totalorder %s285_s18, %s285_s18 }
 0x326   :  { %p458_p10 = scmp.lt.s32.totalorder %s456_s1, %s452_s19 }
 0x328   :  { %p459_p11 = por %p458_p10, %p457_p9 }
 0x32a   :  { %p460_p12 = pnand %p459_p11, %p453_p8 }
 0x3a6   :  { %v254_v61 = vpop.xlane.xlu1 %253 }
 0x3a7   :  { %v255_v62 = vsub.f32 0.0, %v254_v61 }
 0x3a9   :  { %v257_v63 = vsel %vm256_vm2, %v255_v62, 0.0 }
 0x3aa   :  { %v258_v0 = vrot.slane %v257_v63, 4 }
 0x3ac   :  { %v259_v1 = vadd.f32 %v258_v0, %v257_v63 }
 0x3ae   :  { %v260_v2 = vrot.slane %v259_v1, 2 }
 0x3b0   :  { %v261_v3 = vadd.f32 %v260_v2, %v259_v1 }
 0x3b2   :  { %v262_v4 = vrot.slane %v261_v3, 1 }
 0x3b4   :  { %v263_v5 = vadd.f32 %v262_v4, %v261_v3 }
 0x3b6   :  { %v265_v6 = vmul.f32 0.5, %v263_v5 }
 0x3b8   :  { %267 = vst.msk [vmem:[#allocation4] sm:$0x1] %vm266_vm3, %v265_v6 }
 0x3b9   :  { %463 = shalt.err (!%p460_p12)
}
 0x3ba   :  { %s464_s0 = scalar_lea.hbm %s650_s7, 16 }
 0x3bb   :  { %p465_p13 = scmp.ne.s32.totalorder %s650_s7, %s464_s0  ;;  %p468_p0 = scmp.lt.u32.totalorder %s464_s0, %s650_s7 }
 0x3bd   :  { %p470_p1 = pnand %p468_p0, %p465_p13 }
 0x3bf   :  { %473 = shalt.err (!%p470_p1)
}
 0x3c0   :  { %287 = dma.vmem_to_hbm [thread:$0]  %s285_s18, 16, %s650_s7, [#allocation5]  }
 0x3c1   :  { %474 = dma.done.wait [#allocation3], 32  }
 0x3c2   :  { %475 = vsyncadd [#allocation3], 4294967264 }
 0x3c3   :  { %476 = dma.done.wait [#allocation5], 16  }
 0x3c4   :  { %477 = vsyncadd [#allocation5], 4294967280 }
 0x3c5   :  { %294 = vsyncpa [#allocation3], 1 }
 0x3c6   :  { %295 = vsyncpa [#allocation5], 1 }

// kernel: bert_with_loss_forward.5
= control target key start
LH: loop header
LB: loop body
LE: loop exit
PB: predicated region body
PF: predicated region fallthrough
CT: control target
= control target key end

     0   :  { %s3278_s29 = smov 0   ;;  %s3866_s0 = inlined_call_operand.vmem [shape: f32[32,128], index: 0, kind: input, shape index: {}]   ;;  %s3867_s1 = inlined_call_operand.vmem [shape: f32[2,1,16], index: 1, kind: input, shape index: {}]   ;;  %s3868_s2 = inlined_call_operand.vmem [shape: bf16[128,384], index: 2, kind: input, shape index: {}]   ;;  %s3869_s3 = inlined_call_operand.vmem [shape: f32[1,384], index: 3, kind: input, shape index: {}]   ;;  %s3870_s4 = inlined_call_operand.vmem [shape: bf16[128,128], index: 4, kind: input, shape index: {}]   ;;  %s3871_s5 = inlined_call_operand.vmem [shape: f32[1,128], index: 5, kind: input, shape index: {}, may-alias: {5,7,11,13}]   ;;  %s3872_s6 = inlined_call_operand.vmem [shape: f32[1,128], index: 6, kind: input, shape index: {}, may-alias: {6,12}]   ;;  %s3873_s7 = inlined_call_operand.vmem [shape: f32[1,128], index: 7, kind: input, shape index: {}, may-alias: {5,7,11,13}]   ;;  %s3874_s8 = inlined_call_operand.vmem [shape: bf16[128,512], index: 8, kind: input, shape index: {}]   ;;  %s3875_s9 = inlined_call_operand.vmem [shape: f32[1,512], index: 9, kind: input, shape index: {}]   ;;  %s3876_s10 = inlined_call_operand.vmem [shape: bf16[512,128], index: 10, kind: input, shape index: {}]   ;;  %s3877_s11 = inlined_call_operand.vmem [shape: f32[1,128], index: 11, kind: input, shape index: {}, may-alias: {5,7,11,13}]   ;;  %s3878_s12 = inlined_call_operand.vmem [shape: f32[1,128], index: 12, kind: input, shape index: {}, may-alias: {6,12}]   ;;  %s3879_s13 = inlined_call_operand.vmem [shape: f32[1,128], index: 13, kind: input, shape index: {}, may-alias: {5,7,11,13}]   ;;  %s3880_s14 = inlined_call_operand.vmem [shape: f32[32,128], index: 14, kind: output, shape index: {}]  }
   0x1 LB: > { %s3284_s30 = sadd.s32 4294967295, %s3195_s29   ;;  %p2590_p0 = scmp.ge.s32.totalorder %s3195_s29, 1  ;;  %s3195_s29 = sphi %s3278_s29, %s24_s29  }
   0x2   : > { %p421_p1 = scmp.lt.s32.totalorder %s3195_s29, 3 }
   0x4   : > { %p422_p2 = pnand %p2590_p0, %p421_p1 }
   0x5   : > { %v3013_v0 = vld [vmem:[%s3868_s2 + $0x4] ss:$12 sps:$4 sm:$0xff] (!%p422_p2)   ;;  %s2591_s17 = sshll.u32 (!%p422_p2), %s3284_s30, 1  ;;  %v3015_v1 = vld [vmem:[%s3868_s2] ss:$12 sps:$4 sm:$0xff] (!%p422_p2)   ;;  %v3197_v2 = vmov (!%p422_p2), 0   ;;  %v523_v20 = vlaneseq (!%p422_p2) }
   0x6   : > { %425 = sbr.rel (%p422_p2) target bundleno = 3552 (0xde0), region = 76  ;;  %698 = vmatprep.mubr.bf16.mxu0 (!%p422_p2), %v3197_v2  ;;  %666 = vmatprep.subr.bf16.mxu0 (!%p422_p2), %v3013_v0  ;;  %v3016_v3 = vld [vmem:[%s3868_s2 + $0x1c] ss:$12 sps:$4 sm:$0xff] (!%p422_p2)   ;;  %v3018_v4 = vld [vmem:[%s3868_s2 + $0x18] ss:$12 sps:$4 sm:$0xff] (!%p422_p2)   ;;  %p471_p3 = scmp.lt.s32.totalorder (!%p422_p2), %s2591_s17, 3 }
   0x7   : > { %667 = vmatpush1.bf16.msra.mxu0 (!%p422_p2), %v3015_v1  ;;  %v3019_v5 = vld [vmem:[%s3868_s2 + $0x34] ss:$12 sps:$4 sm:$0xff] (!%p422_p2)   ;;  %v3021_v6 = vld [vmem:[%s3868_s2 + $0x30] ss:$12 sps:$4 sm:$0xff] (!%p422_p2)   ;;  %v3022_v7 = vld [vmem:[%s3868_s2 + $0x4c] ss:$12 sps:$4 sm:$0xff] (!%p422_p2)  }
   0x8   : > { %668 = vmatprep.subr.bf16.mxu0 (!%p422_p2), %v3016_v3  ;;  %v3024_v8 = vld [vmem:[%s3868_s2 + $0x48] ss:$12 sps:$4 sm:$0xff] (!%p422_p2)   ;;  %v3025_v9 = vld [vmem:[%s3868_s2 + $0x64] ss:$12 sps:$4 sm:$0xff] (!%p422_p2)   ;;  %v3027_v10 = vld [vmem:[%s3868_s2 + $0x60] ss:$12 sps:$4 sm:$0xff] (!%p422_p2)  }
   0x9   : > { %v3028_v11 = vld [vmem:[%s3868_s2 + $0x7c] ss:$12 sps:$4 sm:$0xff] (!%p422_p2)   ;;  %v3030_v12 = vld [vmem:[%s3868_s2 + $0x78] ss:$12 sps:$4 sm:$0xff] (!%p422_p2)   ;;  %v3031_v13 = vld [vmem:[%s3868_s2 + $0x94] ss:$12 sps:$4 sm:$0xff] (!%p422_p2)  }
   0xa   : > { %v3033_v14 = vld [vmem:[%s3868_s2 + $0x90] ss:$12 sps:$4 sm:$0xff] (!%p422_p2)   ;;  %v3034_v15 = vld [vmem:[%s3868_s2 + $0xac] ss:$12 sps:$4 sm:$0xff] (!%p422_p2)   ;;  %v3036_v16 = vld [vmem:[%s3868_s2 + $0xa8] ss:$12 sps:$4 sm:$0xff] (!%p422_p2)  }
   0xb   : > { %669 = vmatpush1.bf16.msra.mxu0 (!%p422_p2), %v3018_v4  ;;  %v3352_v21 = vshrl.u32 (!%p422_p2), %v523_v20, 7  ;;  %v3358_v23 = vld [vmem:[%s3869_s3] sm:$0x7] (!%p422_p2)  ;;  %v3037_v26 = vld [vmem:[%s3868_s2 + $0x8] ss:$12 sps:$4 sm:$0xff] (!%p422_p2)   ;;  %v3198_v27 = vmov (!%p422_p2), 0.0  }
   0xc   : > { %670 = vmatprep.subr.bf16.mxu0 (!%p422_p2), %v3019_v5  ;;  %2818 = vmatprep.subr.bf16.mxu1 (!%p422_p2), %v3198_v27  ;;  %vm3199_vm0 = vmmov (!%p422_p2), 0   ;;  %vm751_vm1 = vcmask (!%p422_p2), 261120   ;;  %v3038_v30 = vld [vmem:[%s3868_s2 + $0x20] ss:$12 sps:$4 sm:$0xff] (!%p422_p2)   ;;  %v3039_v38 = vld [vmem:[%s3868_s2 + $0x38] ss:$12 sps:$4 sm:$0xff] (!%p422_p2)  }
   0xd   : > { %s3884_s17 = smov (!%p471_p3, %s2591_s17), 3  ;;  %v525_v22 = vsub.s32 0, %v3352_v21  ;;  %v529_v24 = vsub.s32 1, %v3352_v21  ;;  %2834 = vmatprep.mubr.msk.bf16.mxu1 %vm3199_vm0, %v3198_v27  ;;  %2819 = vmatpush3.bf16.msra.mxu1 %v3037_v26  ;;  %vm3383_vm2 = vmpackc.low %vm751_vm1, %vm751_vm1  ;;  %s3200_s23 = smov 64   ;;  %v3040_v41 = vld [vmem:[%s3868_s2 + $0x50] ss:$12 sps:$4 sm:$0xff]  }
   0xe   : > { %s2592_s21 = sshll.u32 %s3884_s17, 3  ;;  %2820 = vmatprep.subr.bf16.mxu1 %v3198_v27  ;;  %s3201_s26 = smov 96   ;;  %v3041_v42 = vld [vmem:[%s3868_s2 + $0x68] ss:$12 sps:$4 sm:$0xff]   ;;  %v3042_v44 = vld [vmem:[%s3868_s2 + $0x80] ss:$12 sps:$4 sm:$0xff]  }
   0xf   : > { %671 = vmatpush1.bf16.msra.mxu0 %v3021_v6  ;;  %s474_s24 = scalar_lea.vmem %s3866_s0, %s2592_s21  ;;  %v526_v25 = vrot.slane %v3358_v23, %v525_v22  ;;  %v530_v29 = vrot.slane %v3358_v23, %v529_v24  ;;  %v3043_v45 = vld [vmem:[%s3868_s2 + $0x98] ss:$12 sps:$4 sm:$0xff]   ;;  %v3044_v46 = vld [vmem:[%s3868_s2 + $0xb0] ss:$12 sps:$4 sm:$0xff]   ;;  %p476_p4 = scmp.lt.s32.totalorder %s3284_s30, 1  ;;  %vm849_vm3 = vcmask 130048  }
  0x10   : > { %672 = vmatprep.subr.bf16.mxu0 %v3022_v7  ;;  %v3346_v17 = vld [vmem:[%s474_s24] sm:$0xff]  ;;  %v3348_v18 = vld [vmem:[%s474_s24 + $0x8] sm:$0xff]  ;;  %v533_v56 = vsub.s32 2, %v3352_v21  ;;  %vm1593_vm4 = vcmask 523264   ;;  %vm1596_vm5 = vcmask 785408  }
  0x11   : > { %v488_v19 = vpack.c.bf16 %v3348_v18, %v3346_v17  ;;  %2821 = vmatpush3.bf16.msra.mxu1 %v3038_v30  ;;  %s3886_s30 = smov (!%p476_p4, %s3284_s30), 1 }
  0x12   : > { %2822 = vmatprep.subr.bf16.mxu1 %v3198_v27  ;;  %s478_s27 = scalar_lea.vmem %s3867_s1, %s3886_s30  ;;  %v534_v58 = vrot.slane %v3358_v23, %v533_v56  ;;  %s3202_s30 = smov 32  }
  0x13   : > { %673 = vmatpush1.bf16.msra.mxu0 %v3024_v8  ;;  %v3430_v49 = vld [vmem:[%s478_s27] ss:$0 sm:$0xff] }
  0x14   : > { %674 = vmatprep.subr.bf16.mxu0 %v3025_v9 }
  0x15   : > { %2823 = vmatpush3.bf16.msra.mxu1 %v3039_v38 }
  0x16   : > { %2824 = vmatprep.subr.bf16.mxu1 %v3198_v27 }
  0x17   : > { %675 = vmatpush1.bf16.msra.mxu0 %v3027_v10 }
  0x18   : > { %676 = vmatprep.subr.bf16.mxu0 %v3028_v11 }
  0x19   : > { %2825 = vmatpush3.bf16.msra.mxu1 %v3040_v41 }
  0x1a   : > { %2826 = vmatprep.subr.bf16.mxu1 %v3198_v27 }
  0x1b   : > { %677 = vmatpush1.bf16.msra.mxu0 %v3030_v12 }
  0x1c   : > { %678 = vmatprep.subr.bf16.mxu0 %v3031_v13 }
  0x1d   : > { %2827 = vmatpush3.bf16.msra.mxu1 %v3041_v42 }
  0x1e   : > { %2828 = vmatprep.subr.bf16.mxu1 %v3198_v27 }
  0x1f   : > { %679 = vmatpush1.bf16.msra.mxu0 %v3033_v14 }
  0x20   : > { %680 = vmatprep.subr.bf16.mxu0 %v3034_v15 }
  0x21   : > { %2829 = vmatpush3.bf16.msra.mxu1 %v3042_v44 }
  0x22   : > { %2830 = vmatprep.subr.bf16.mxu1 %v3198_v27 }
  0x23   : > { %681 = vmatpush1.bf16.msra.mxu0 %v3036_v16 }
  0x25   : > { %2831 = vmatpush3.bf16.msra.mxu1 %v3043_v45 }
  0x26   : > { %699 = vmatmul.mubr.bf16.vlgmr.msra.gmra.mrb[0].mxu0 %v488_v19  ;;  %2832 = vmatprep.subr.bf16.mxu1 %v3198_v27 }
  0x29   : > { %2833 = vmatpush3.bf16.msra.mxu1 %v3044_v46 }
  0x2c   : > { %2835 = vmatmul.mubr.bf16.vlgmr.msra.gmra.mrb[0].mxu1 %v488_v19 }
  0xf9   : > { %v700_v28 = vpop.f32.mrb[0].mxu0 }
  0xfa   : > { %v3376_v31 = vadd.f32 %v700_v28, %v526_v25  ;;  %v702_v32 = vpop.f32.mrb[1].mxu0 }
  0xfb   : > { %v704_v33 = vpop.f32.mrb[2].mxu0  ;;  %v703_v35 = vadd.f32 %v702_v32, %v530_v29 }
  0xfc   : > { %v706_v34 = vpop.f32.mrb[3].mxu0  ;;  %2842 = vmatprep.mubr.msk.f32.mxu0 %vm751_vm1, %v3376_v31  ;;  %v3408_v43 = vadd.f32 %v704_v33, %v526_v25 }
  0xfd   : > { %v707_v36 = vadd.f32 %v706_v34, %v530_v29 }
  0xff   : > { %v3391_v39 = vpack.i.bf16 %v707_v36, %v703_v35  ;;  %v2914_v40 = vpack.c.bf16 %v707_v36, %v703_v35  ;;  %v743_v57 = vpop.f32.mrb[0].mxu1 }
 0x100   : > { %v2836_v59 = vpop.f32.mrb[1].mxu1  ;;  %v3440_v61 = vadd.f32 %v743_v57, %v534_v58 }
 0x101   : > { %2974 = vrot.lane.b32.xlu1 %v3391_v39, %s3200_s23  ;;  %2916 = vmatprep.subr.msk.bf16.mxu0 %vm3383_vm2, %v2914_v40  ;;  %v746_v60 = vpop.f32.mrb[2].mxu1 }
 0x102   : > { %2919 = vmatpush3.bf16.xpose.msk.msra.mxu0 %vm3383_vm2, %v2914_v40  ;;  %v3442_v62 = vadd.f32 %v746_v60, %v534_v58  ;;  %v2837_v63 = vpop.f32.mrb[3].mxu1 }
 0x104   : > { %v2920_v0 = vpack.c.bf16 %v3442_v62, %v3440_v61 }
 0x105   : > { %953 = vrot.lane.b32.xlu1 %v3376_v31, %s3201_s26 }
 0x106   : > { %2921 = vmatprep.subr.bf16.mxu0 %v2920_v0 }
 0x109   : > { %2843 = vmatmul.mubr.msk.f32.vlgmr.msra.gmra.mrb[4].mxu0 %vm751_vm1, %v3408_v43 }
 0x10a   : > { %2923 = vmatpush3.bf16.msra.mxu0 %v2920_v0 }
 0x173   : > { %v2975_v16 = vpop.permute.xlu1 %2974 }
 0x174   : > { %v2977_v28 = vunpack.i.h.bf16 %v2975_v16  ;;  %v2976_v29 = vunpack.i.l.bf16 %v2975_v16 }
 0x176   : > { %v2934_v33 = vpack.c.bf16 %v2977_v28, %v2976_v29 }
 0x177   : > { %v954_v19 = vpop.permute.xlu1 %953 }
 0x1dc   : > { %v2844_v47 = vpop.f32.mrb[4].mxu0 }
 0x1dd   : > { %v830_v48 = vpop.f32.mrb[5].mxu0  ;;  %v840_v50 = vmul.f32 0.17677669, %v2844_v47 }
 0x1de   : > { %v839_v51 = vmul.f32 0.17677669, %v830_v48 }
 0x1df   : > { %v848_v54 = vadd.f32 %v3430_v49, %v840_v50 }
 0x1e0   : > { %v847_v52 = vadd.f32 %v3430_v49, %v839_v51 }
 0x1e1   : > { %v853_v55 = vsel %vm849_vm3, %v848_v54, -inf }
 0x1e2   : > { %v850_v53 = vsel %vm849_vm3, %v847_v52, -inf }
 0x1e3   : > { %851 = vmax.xlane.f32.xlu0 %v850_v53 }
 0x1e7   : > { %854 = vmax.xlane.f32.xlu0 %v853_v55 }
 0x1fd   : > { %2969 = vrot.lane.b32.xlu0 %v3391_v39, %s3201_s26 }
 0x201   : > { %1159 = vrot.lane.b32.xlu0 %v3376_v31, %s3200_s23 }
 0x270   : > { %v852_v1 = vpop.xlane.xlu0 %851 }
 0x271   : > { %v856_v3 = vsub.f32 %v847_v52, %v852_v1 }
 0x273   : > { %v858_v6 = vmul.f32 1.442695, %v856_v3  ;;  %v3490_v3 = vpack.i.bf16 %v3442_v62, %v3440_v61 }
 0x274   : > { %v855_v4 = vpop.xlane.xlu0 %854 }
 0x275   : > { %v857_v5 = vsub.f32 %v848_v54, %v855_v4 }
 0x277   : > { %v860_v7 = vmul.f32 1.442695, %v857_v5 }
 0x278   : > { %v2970_v8 = vpop.permute.xlu0 %2969 }
 0x279   : > { %3133 = vpow2.f32 %v860_v7  ;;  %v2972_v9 = vunpack.i.h.bf16 %v2970_v8  ;;  %v2971_v10 = vunpack.i.l.bf16 %v2970_v8 }
 0x27a   : > { %3135 = vpow2.f32 %v858_v6 }
 0x27b   : > { %v2924_v11 = vpack.c.bf16 %v2972_v9, %v2971_v10 }
 0x27c   : > { %v1160_v35 = vpop.permute.xlu0 %1159 }
 0x27d   : > { %2926 = vmatprep.subr.msk.bf16.mxu0 %vm3383_vm2, %v2924_v11 }
 0x283   : > { %v3134_v12 = vpop.eup %3133 }
 0x284   : > { %v865_v13 = vsel %vm849_vm3, %v3134_v12, 0.0  ;;  %v3136_v14 = vpop.eup %3135 }
 0x285   : > { %866 = vadd.xlane.f32.xlu1 %v865_v13  ;;  %v862_v15 = vsel %vm849_vm3, %v3136_v14, 0.0 }
 0x289   : > { %863 = vadd.xlane.f32.xlu1 %v862_v15 }
 0x29a   : > { %955 = vrot.lane.b32.xlu1 %v3408_v43, %s3201_s26 }
 0x29e   : > { %1161 = vrot.lane.b32.xlu1 %v3408_v43, %s3200_s23 }
 0x312   : > { %v867_v20 = vpop.xlane.xlu1 %866 }
 0x313   : > { %3137 = vrcp.f32 %v867_v20 }
 0x316   : > { %v864_v23 = vpop.xlane.xlu1 %863 }
 0x317   : > { %3139 = vrcp.f32 %v864_v23 }
 0x31a   : > { %v956_v34 = vpop.permute.xlu1 %955 }
 0x31d   : > { %v3138_v25 = vpop.eup %3137 }
 0x31e   : > { %v871_v32 = vmul.f32 %v3138_v25, %v3134_v12  ;;  %v1162_v36 = vpop.permute.xlu1 %1161 }
 0x321   : > { %v3140_v26 = vpop.eup %3139 }
 0x322   : > { %v870_v30 = vmul.f32 %v3140_v26, %v3136_v14 }
 0x324   : > { %2849 = vmatprep.mubr.msk.f32.mxu0 %vm849_vm3, %v870_v30 }
 0x325   : > { %2850 = vmatmul.mubr.msk.f32.vlgmr.msra.gmra.mrb[6].mxu0 %vm849_vm3, %v871_v32 }
 0x326   : > { %2929 = vmatpush3.bf16.xpose.msk.msra.mxu0 %vm3383_vm2, %v2924_v11  ;;  %2856 = vmatprep.mubr.msk.f32.mxu0 %vm751_vm1, %v954_v19 }
 0x327   : > { %2936 = vmatprep.subr.msk.bf16.mxu0 %vm3383_vm2, %v2934_v33 }
 0x32d   : > { %2857 = vmatmul.mubr.msk.f32.vlgmr.msra.gmra.mrb[8].mxu0 %vm751_vm1, %v956_v34 }
 0x32e   : > { %2939 = vmatpush3.bf16.xpose.msk.msra.mxu0 %vm3383_vm2, %v2934_v33  ;;  %2870 = vmatprep.mubr.msk.f32.mxu0 %vm751_vm1, %v1160_v35 }
 0x335   : > { %2871 = vmatmul.mubr.msk.f32.vlgmr.msra.gmra.mrb[10].mxu0 %vm751_vm1, %v1162_v36 }
 0x3f8   : > { %v3470_v38 = vpop.f32.mrb[6].mxu0 }
 0x3f9   : > { %v3472_v40 = vpop.f32.mrb[7].mxu0 }
 0x400   : > { %v2858_v41 = vpop.f32.mrb[8].mxu0 }
 0x401   : > { %v1035_v42 = vpop.f32.mrb[9].mxu0  ;;  %v1045_v53 = vmul.f32 0.17677669, %v2858_v41 }
 0x402   : > { %v1044_v10 = vmul.f32 0.17677669, %v1035_v42 }
 0x403   : > { %v1047_v54 = vadd.f32 %v3430_v49, %v1045_v53 }
 0x404   : > { %v1046_v11 = vadd.f32 %v3430_v49, %v1044_v10 }
 0x405   : > { %v1051_v55 = vsel %vm849_vm3, %v1047_v54, -inf }
 0x406   : > { %v1048_v12 = vsel %vm849_vm3, %v1046_v11, -inf }
 0x408   : > { %v2872_v44 = vpop.f32.mrb[10].mxu0 }
 0x409   : > { %v1251_v45 = vmul.f32 0.17677669, %v2872_v44  ;;  %v1241_v46 = vpop.f32.mrb[11].mxu0 }
 0x40a   : > { %v1250_v47 = vmul.f32 0.17677669, %v1241_v46 }
 0x40b   : > { %v1253_v48 = vadd.f32 %v3430_v49, %v1251_v45 }
 0x40c   : > { %v1252_v50 = vadd.f32 %v3430_v49, %v1250_v47 }
 0x40d   : > { %v1257_v51 = vsel %vm849_vm3, %v1253_v48, -inf }
 0x40e   : > { %1258 = vmax.xlane.f32.xlu1 %v1257_v51  ;;  %v1254_v52 = vsel %vm849_vm3, %v1252_v50, -inf }
 0x40f   : > { %1255 = vmax.xlane.f32.xlu0 %v1254_v52 }
 0x41f   : > { %2984 = vrot.lane.b32.xlu1 %v3391_v39, %s3202_s30 }
 0x423   : > { %1363 = vrot.lane.b32.xlu1 %v3376_v31, %s3202_s30 }
 0x427   : > { %1365 = vrot.lane.b32.xlu1 %v3408_v43, %s3202_s30 }
 0x44b   : > { %1052 = vmax.xlane.f32.xlu1 %v1051_v55 }
 0x49b   : > { %v1259_v57 = vpop.xlane.xlu1 %1258 }
 0x49c   : > { %v1261_v58 = vsub.f32 %v1253_v48, %v1259_v57  ;;  %v1256_v59 = vpop.xlane.xlu0 %1255 }
 0x49d   : > { %v1260_v60 = vsub.f32 %v1252_v50, %v1256_v59 }
 0x49e   : > { %v1264_v63 = vmul.f32 1.442695, %v1261_v58 }
 0x49f   : > { %v1262_v0 = vmul.f32 1.442695, %v1260_v60  ;;  %v2985_v4 = vpop.permute.xlu1 %2984 }
 0x4a0   : > { %3141 = vpow2.f32 %v1264_v63  ;;  %v2987_v16 = vunpack.i.h.bf16 %v2985_v4  ;;  %v2986_v19 = vunpack.i.l.bf16 %v2985_v4 }
 0x4a1   : > { %3143 = vpow2.f32 %v1262_v0 }
 0x4a2   : > { %v2944_v26 = vpack.c.bf16 %v2987_v16, %v2986_v19 }
 0x4a3   : > { %v1364_v5 = vpop.permute.xlu1 %1363 }
 0x4a7   : > { %v1366_v6 = vpop.permute.xlu1 %1365 }
 0x4aa   : > { %v3142_v39 = vpop.eup %3141 }
 0x4ab   : > { %v1269_v31 = vsel %vm849_vm3, %v3142_v39, 0.0  ;;  %v3144_v1 = vpop.eup %3143 }
 0x4ac   : > { %1270 = vadd.xlane.f32.xlu0 %v1269_v31  ;;  %v1266_v43 = vsel %vm849_vm3, %v3144_v1, 0.0 }
 0x4b0   : > { %1267 = vadd.xlane.f32.xlu0 %v1266_v43 }
 0x4c6   : > { %2979 = vrot.lane.b32.xlu0 %v3490_v3, %s3200_s23 }
 0x4d8   : > { %v1053_v7 = vpop.xlane.xlu1 %1052 }
 0x4d9   : > { %v1055_v8 = vsub.f32 %v1047_v54, %v1053_v7 }
 0x4db   : > { %v1058_v9 = vmul.f32 1.442695, %v1055_v8 }
 0x4dd   : > { %3145 = vpow2.f32 %v1058_v9 }
 0x4e5   : > { %1049 = vmax.xlane.f32.xlu0 %v1048_v12 }
 0x4e7   : > { %v3496_v13 = vpop.eup %3145 }
 0x4e8   : > { %v1063_v61 = vsel %vm849_vm3, %v3496_v13, 0.0 }
 0x4e9   : > { %1064 = vadd.xlane.f32.xlu1 %v1063_v61 }
 0x539   : > { %v1271_v62 = vpop.xlane.xlu0 %1270 }
 0x53a   : > { %3147 = vrcp.f32 %v1271_v62 }
 0x53d   : > { %v1268_v14 = vpop.xlane.xlu0 %1267 }
 0x53e   : > { %3149 = vrcp.f32 %v1268_v14 }
 0x541   : > { %v2980_v15 = vpop.permute.xlu0 %2979 }
 0x542   : > { %v2982_v20 = vunpack.i.h.bf16 %v2980_v15  ;;  %v2981_v23 = vunpack.i.l.bf16 %v2980_v15 }
 0x544   : > { %v2940_v25 = vpack.c.bf16 %v2982_v20, %v2981_v23  ;;  %v3148_v28 = vpop.eup %3147  ;;  %v3046_v23 = vld [vmem:[%s3870_s4 + $0x8] sm:$0xff]  }
 0x545   : > { %v1275_v32 = vmul.f32 %v3148_v28, %v3142_v39  ;;  %v3049_v28 = vld [vmem:[%s3870_s4 + $0x20] sm:$0xff]  }
 0x546   : > { %2941 = vmatprep.subr.bf16.mxu0 %v2940_v25 }
 0x547   : > { %2943 = vmatpush3.bf16.msra.mxu0 %v2940_v25  ;;  %v3047_v25 = vld [vmem:[%s3870_s4 + $0x10] sm:$0xff]  }
 0x548   : > { %v3150_v29 = vpop.eup %3149  ;;  %2946 = vmatprep.subr.msk.bf16.mxu0 %vm3383_vm2, %v2944_v26 }
 0x549   : > { %v1274_v30 = vmul.f32 %v3150_v29, %v3144_v1  ;;  %v3050_v29 = vld [vmem:[%s3870_s4 + $0x28] sm:$0xff]  }
 0x54b   : > { %2877 = vmatprep.mubr.msk.f32.mxu0 %vm849_vm3, %v1274_v30  ;;  %v3051_v30 = vld [vmem:[%s3870_s4 + $0x30] sm:$0xff]  }
 0x54c   : > { %2878 = vmatmul.mubr.msk.f32.vlgmr.msra.gmra.mrb[12].mxu0 %vm849_vm3, %v1275_v32  ;;  %v3052_v32 = vld [vmem:[%s3870_s4 + $0x38] sm:$0xff]  }
 0x54d   : > { %2884 = vmatprep.mubr.msk.f32.mxu0 %vm751_vm1, %v1364_v5 }
 0x550   : > { %2949 = vmatpush3.bf16.xpose.msk.msra.mxu0 %vm3383_vm2, %v2944_v26  ;;  %v3048_v26 = vld [vmem:[%s3870_s4 + $0x18] sm:$0xff]  }
 0x557   : > { %2885 = vmatmul.mubr.msk.f32.vlgmr.msra.gmra.mrb[14].mxu0 %vm751_vm1, %v1366_v6 }
 0x558   : > { %2002 = vmatprep.mubr.bf16.mxu0 %v3197_v2 }
 0x572   : > { %v1050_v34 = vpop.xlane.xlu0 %1049 }
 0x573   : > { %v1054_v41 = vsub.f32 %v1046_v11, %v1050_v34 }
 0x575   : > { %v1056_v42 = vmul.f32 1.442695, %v1054_v41 }
 0x576   : > { %v1065_v4 = vpop.xlane.xlu1 %1064 }
 0x577   : > { %3151 = vpow2.f32 %v1056_v42 }
 0x581   : > { %v3152_v52 = vpop.eup %3151 }
 0x582   : > { %v1060_v53 = vsel %vm849_vm3, %v3152_v52, 0.0 }
 0x61f   : > { %v3509_v33 = vpop.f32.mrb[12].mxu0 }
 0x620   : > { %v3511_v35 = vpop.f32.mrb[13].mxu0 }
 0x621   : > { %v3003_v36 = vpack.i.bf16 %v3509_v33, %v3511_v35 }
 0x62a   : > { %v2886_v44 = vpop.f32.mrb[14].mxu0 }
 0x62b   : > { %v1445_v45 = vpop.f32.mrb[15].mxu0  ;;  %v1455_v46 = vmul.f32 0.17677669, %v2886_v44 }
 0x62c   : > { %v1454_v37 = vmul.f32 0.17677669, %v1445_v45 }
 0x62d   : > { %v1457_v50 = vadd.f32 %v3430_v49, %v1455_v46 }
 0x62e   : > { %v1456_v47 = vadd.f32 %v3430_v49, %v1454_v37 }
 0x62f   : > { %v1461_v51 = vsel %vm849_vm3, %v1457_v50, -inf }
 0x630   : > { %v1458_v48 = vsel %vm849_vm3, %v1456_v47, -inf }
 0x631   : > { %1459 = vmax.xlane.f32.xlu0 %v1458_v48 }
 0x635   : > { %1462 = vmax.xlane.f32.xlu0 %v1461_v51 }
 0x639   : > { %1061 = vadd.xlane.f32.xlu0 %v1060_v53 }
 0x6be   : > { %v1460_v54 = vpop.xlane.xlu0 %1459 }
 0x6bf   : > { %v1464_v55 = vsub.f32 %v1456_v47, %v1460_v54 }
 0x6c1   : > { %v1466_v57 = vmul.f32 1.442695, %v1464_v55 }
 0x6c2   : > { %v1463_v58 = vpop.xlane.xlu0 %1462 }
 0x6c3   : > { %3153 = vpow2.f32 %v1466_v57  ;;  %v1465_v59 = vsub.f32 %v1457_v50, %v1463_v58 }
 0x6c5   : > { %v1468_v60 = vmul.f32 1.442695, %v1465_v59 }
 0x6c6   : > { %v1062_v63 = vpop.xlane.xlu0 %1061 }
 0x6c7   : > { %3155 = vpow2.f32 %v1468_v60  ;;  %v2644_v60 = vld [vmem:[%s3871_s5] ss:$0 sm:$0xff] }
 0x6c8   : > { %3157 = vrcp.f32 %v1062_v63 }
 0x6c9   : > { %3159 = vrcp.f32 %v1065_v4  ;;  %v3056_v4 = vld [vmem:[%s3874_s8 + $0x8] ss:$16 sps:$4 sm:$0xff]  }
 0x6cd   : > { %v3154_v0 = vpop.eup %3153 }
 0x6ce   : > { %v1470_v49 = vsel %vm849_vm3, %v3154_v0, 0.0 }
 0x6cf   : > { %1471 = vadd.xlane.f32.xlu0 %v1470_v49 }
 0x6d1   : > { %v3156_v39 = vpop.eup %3155 }
 0x6d2   : > { %v3158_v31 = vpop.eup %3157  ;;  %v1473_v1 = vsel %vm849_vm3, %v3156_v39, 0.0 }
 0x6d3   : > { %1474 = vadd.xlane.f32.xlu1 %v1473_v1  ;;  %v1068_v43 = vmul.f32 %v3158_v31, %v3152_v52  ;;  %v3160_v11 = vpop.eup %3159 }
 0x6d4   : > { %v1069_v15 = vmul.f32 %v3160_v11, %v3496_v13  ;;  %v3045_v13 = vld [vmem:[%s3870_s4] sm:$0xff]  }
 0x6d5   : > { %2863 = vmatprep.mubr.msk.f32.mxu1 %vm849_vm3, %v1068_v43  ;;  %v3055_v43 = vld [vmem:[%s3874_s8 + $0x4] ss:$16 sps:$4 sm:$0xff]  }
 0x6d6   : > { %1970 = vmatprep.subr.bf16.mxu0 %v3055_v43  ;;  %v3105_v43 = vld [vmem:[%s3876_s10 + $0x48] sm:$0xff]  }
 0x6e4   : > { %2994 = vrot.lane.b32.xlu1 %v3490_v3, %s3202_s30 }
 0x6e5   : > { %2989 = vrot.lane.b32.xlu0 %v3490_v3, %s3201_s26 }
 0x75c   : > { %v1472_v5 = vpop.xlane.xlu0 %1471 }
 0x75d   : > { %3161 = vrcp.f32 %v1472_v5  ;;  %v3064_v5 = vld [vmem:[%s3874_s8 + $0x2c] ss:$16 sps:$4 sm:$0xff]  }
 0x760   : > { %v1475_v6 = vpop.xlane.xlu1 %1474  ;;  %v2990_v7 = vpop.permute.xlu0 %2989 }
 0x761   : > { %3163 = vrcp.f32 %v1475_v6  ;;  %v2992_v8 = vunpack.i.h.bf16 %v2990_v7  ;;  %v2991_v9 = vunpack.i.l.bf16 %v2990_v7  ;;  %v3059_v6 = vld [vmem:[%s3874_s8 + $0x20] ss:$16 sps:$4 sm:$0xff]   ;;  %v3062_v7 = vld [vmem:[%s3874_s8 + $0x28] ss:$16 sps:$4 sm:$0xff]  }
 0x763   : > { %v2930_v10 = vpack.c.bf16 %v2992_v8, %v2991_v9 }
 0x764   : > { %v2995_v12 = vpop.permute.xlu1 %2994 }
 0x765   : > { %v2997_v61 = vunpack.i.h.bf16 %v2995_v12  ;;  %v2996_v62 = vunpack.i.l.bf16 %v2995_v12  ;;  %2931 = vmatprep.subr.bf16.mxu1 %v2930_v10 }
 0x766   : > { %2933 = vmatpush3.bf16.msra.mxu1 %v2930_v10 }
 0x767   : > { %v3162_v14 = vpop.eup %3161  ;;  %v2950_v3 = vpack.c.bf16 %v2997_v61, %v2996_v62 }
 0x768   : > { %v1478_v16 = vmul.f32 %v3162_v14, %v3154_v0 }
 0x769   : > { %2864 = vmatmul.mubr.msk.f32.vlgmr.msra.gmra.mrb[4].mxu1 %vm849_vm3, %v1069_v15  ;;  %2951 = vmatprep.subr.bf16.mxu1 %v2950_v3  ;;  %v3067_v15 = vld [vmem:[%s3874_s8 + $0x44] ss:$16 sps:$4 sm:$0xff]  }
 0x76a   : > { %2953 = vmatpush3.bf16.msra.mxu1 %v2950_v3  ;;  %2891 = vmatprep.mubr.msk.f32.mxu1 %vm849_vm3, %v1478_v16  ;;  %v3070_v3 = vld [vmem:[%s3874_s8 + $0x4c] ss:$16 sps:$4 sm:$0xff]   ;;  %v3065_v16 = vld [vmem:[%s3874_s8 + $0x40] ss:$16 sps:$4 sm:$0xff]  }
 0x76b   : > { %v3164_v19 = vpop.eup %3163  ;;  %2894 = vmatprep.subr.bf16.mxu1 %v3198_v27 }
 0x76c   : > { %v1479_v20 = vmul.f32 %v3164_v19, %v3156_v39  ;;  %v3068_v19 = vld [vmem:[%s3874_s8 + $0x48] ss:$16 sps:$4 sm:$0xff]  }
 0x76e   : > { %2892 = vmatmul.mubr.msk.f32.vlgmr.msra.gmra.mrb[6].mxu1 %vm849_vm3, %v1479_v20  ;;  %v3073_v20 = vld [vmem:[%s3874_s8 + $0x64] ss:$16 sps:$4 sm:$0xff]  }
 0x76f   : > { %2910 = vmatprep.mubr.msk.bf16.mxu1 %vm3199_vm0, %v3198_v27  ;;  %2895 = vmatpush3.bf16.msra.mxu1 %v3045_v13  ;;  %v3076_v13 = vld [vmem:[%s3874_s8 + $0x6c] ss:$16 sps:$4 sm:$0xff]  }
 0x770   : > { %2896 = vmatprep.subr.bf16.mxu1 %v3198_v27 }
 0x773   : > { %2897 = vmatpush3.bf16.msra.mxu1 %v3046_v23  ;;  %v3071_v23 = vld [vmem:[%s3874_s8 + $0x60] ss:$16 sps:$4 sm:$0xff]  }
 0x774   : > { %2898 = vmatprep.subr.bf16.mxu1 %v3198_v27 }
 0x777   : > { %2899 = vmatpush3.bf16.msra.mxu1 %v3047_v25  ;;  %v3074_v25 = vld [vmem:[%s3874_s8 + $0x68] ss:$16 sps:$4 sm:$0xff]  }
 0x778   : > { %2900 = vmatprep.subr.bf16.mxu1 %v3198_v27 }
 0x77b   : > { %2901 = vmatpush3.bf16.msra.mxu1 %v3048_v26  ;;  %v3079_v26 = vld [vmem:[%s3874_s8 + $0x84] ss:$16 sps:$4 sm:$0xff]  }
 0x77c   : > { %2902 = vmatprep.subr.bf16.mxu1 %v3198_v27 }
 0x77f   : > { %2903 = vmatpush3.bf16.msra.mxu1 %v3049_v28  ;;  %v3082_v28 = vld [vmem:[%s3874_s8 + $0x8c] ss:$16 sps:$4 sm:$0xff]  }
 0x780   : > { %2904 = vmatprep.subr.bf16.mxu1 %v3198_v27 }
 0x783   : > { %2905 = vmatpush3.bf16.msra.mxu1 %v3050_v29  ;;  %v3077_v29 = vld [vmem:[%s3874_s8 + $0x80] ss:$16 sps:$4 sm:$0xff]  }
 0x784   : > { %2906 = vmatprep.subr.bf16.mxu1 %v3198_v27 }
 0x787   : > { %2907 = vmatpush3.bf16.msra.mxu1 %v3051_v30  ;;  %v3080_v30 = vld [vmem:[%s3874_s8 + $0x88] ss:$16 sps:$4 sm:$0xff]  }
 0x788   : > { %2908 = vmatprep.subr.bf16.mxu1 %v3198_v27 }
 0x78b   : > { %2909 = vmatpush3.bf16.msra.mxu1 %v3052_v32  ;;  %v3085_v32 = vld [vmem:[%s3874_s8 + $0xa4] ss:$16 sps:$4 sm:$0xff]  }
 0x83c   : > { %v2865_v34 = vpop.f32.mrb[4].mxu1 }
 0x83d   : > { %v1150_v41 = vpop.f32.mrb[5].mxu1 }
 0x83e   : > { %v2998_v42 = vpack.i.bf16 %v2865_v34, %v1150_v41  ;;  %v3088_v34 = vld [vmem:[%s3874_s8 + $0xac] ss:$16 sps:$4 sm:$0xff]   ;;  %v3083_v41 = vld [vmem:[%s3874_s8 + $0xa0] ss:$16 sps:$4 sm:$0xff]  }
 0x840   : > { %2999 = vrot.lane.b32.xlu1 %v2998_v42, %s3202_s30  ;;  %v3086_v42 = vld [vmem:[%s3874_s8 + $0xa8] ss:$16 sps:$4 sm:$0xff]  }
 0x841   : > { %v2893_v44 = vpop.f32.mrb[6].mxu1 }
 0x842   : > { %v1558_v45 = vpop.f32.mrb[7].mxu1 }
 0x843   : > { %v3008_v46 = vpack.i.bf16 %v2893_v44, %v1558_v45  ;;  %v3091_v44 = vld [vmem:[%s3874_s8 + $0xc4] ss:$16 sps:$4 sm:$0xff]   ;;  %v3094_v45 = vld [vmem:[%s3874_s8 + $0xcc] ss:$16 sps:$4 sm:$0xff]  }
 0x844   : > { %3004 = vrot.lane.b32.xlu1 %v3003_v36, %s3200_s23 }
 0x845   : > { %3009 = vrot.lane.b32.xlu0 %v3008_v46, %s3201_s26  ;;  %v3089_v46 = vld [vmem:[%s3874_s8 + $0xc0] ss:$16 sps:$4 sm:$0xff]   ;;  %s483_s26 = scalar_lea.vmem %s3880_s14, %s2592_s21 }
 0x8b2   : > { %v3000_v27 = vpop.permute.xlu1 %2999 }
 0x8b3   : > { %v3002_v37 = vunpack.i.h.bf16 %v3000_v27  ;;  %v3001_v47 = vunpack.i.l.bf16 %v3000_v27  ;;  %v3092_v27 = vld [vmem:[%s3874_s8 + $0xc8] ss:$16 sps:$4 sm:$0xff]  }
 0x8b5   : > { %v1592_v53 = vsel %vm751_vm1, %v3470_v38, %v3002_v37  ;;  %v1591_v54 = vsel %vm751_vm1, %v3472_v40, %v3001_v47  ;;  %v3097_v37 = vld [vmem:[%s3874_s8 + $0xe4] ss:$16 sps:$4 sm:$0xff]   ;;  %v3100_v47 = vld [vmem:[%s3874_s8 + $0xec] ss:$16 sps:$4 sm:$0xff]  }
 0x8b6   : > { %v3005_v48 = vpop.permute.xlu1 %3004 }
 0x8b7   : > { %v3007_v50 = vunpack.i.h.bf16 %v3005_v48  ;;  %v3006_v51 = vunpack.i.l.bf16 %v3005_v48  ;;  %v3010_v52 = vpop.permute.xlu0 %3009  ;;  %v3095_v48 = vld [vmem:[%s3874_s8 + $0xe0] ss:$16 sps:$4 sm:$0xff]  }
 0x8b8   : > { %v3012_v55 = vunpack.i.h.bf16 %v3010_v52  ;;  %v3011_v33 = vunpack.i.l.bf16 %v3010_v52 }
 0x8b9   : > { %v1594_v35 = vsel %vm1593_vm4, %v1591_v54, %v3006_v51  ;;  %v1595_v36 = vsel %vm1593_vm4, %v1592_v53, %v3007_v50  ;;  %v3098_v50 = vld [vmem:[%s3874_s8 + $0xe8] ss:$16 sps:$4 sm:$0xff]  }
 0x8ba   : > { %v1598_v57 = vsel %vm1596_vm5, %v1595_v36, %v3012_v55  ;;  %v1597_v58 = vsel %vm1596_vm5, %v1594_v35, %v3011_v33 }
 0x8bb   : > { %v1599_v59 = vpack.c.bf16 %v1598_v57, %v1597_v58  ;;  %v2653_v57 = vld [vmem:[%s3872_s6] ss:$0 sm:$0xff] }
 0x8bd   : > { %2911 = vmatmul.mubr.bf16.vlgmr.msra.gmra.mrb[8].mxu1 %v1599_v59 }
 0x8be   : > { %2045 = vmatprep.mubr.bf16.mxu1 %v3197_v2  ;;  %v3053_v2 = vld [vmem:[%s3874_s8] ss:$16 sps:$4 sm:$0xff]  }
 0x8bf   : > { %1971 = vmatpush1.bf16.msra.mxu0 %v3053_v2  ;;  %v3104_v2 = vld [vmem:[%s3876_s10 + $0x80] sm:$0xff]  }
 0x990   : > { %v1705_v63 = vpop.f32.mrb[8].mxu1 }
 0x991   : > { %v1706_v0 = vadd.f32 %v2644_v60, %v1705_v63  ;;  %v2912_v38 = vpop.f32.mrb[9].mxu1  ;;  %v2654_v63 = vld [vmem:[%s3873_s7] ss:$0 sm:$0xff] }
 0x992   : > { %v1708_v49 = vpop.f32.mrb[10].mxu1 }
 0x993   : > { %v1709_v39 = vadd.f32 %v2644_v60, %v1708_v49  ;;  %v2913_v40 = vpop.f32.mrb[11].mxu1  ;;  %v1712_v31 = vadd.f32 %v1706_v0, %v3346_v17  ;;  %v3058_v17 = vld [vmem:[%s3874_s8 + $0xc] ss:$16 sps:$4 sm:$0xff]  }
 0x994   : > { %2013 = vmatprep.subr.bf16.mxu1 %v3058_v17  ;;  %v3101_v40 = vld [vmem:[%s3876_s10 + $0x40] sm:$0xff]   ;;  %v3107_v17 = vld [vmem:[%s3876_s10 + $0x8] sm:$0xff]  }
 0x995   : > { %1716 = vadd.xlane.f32.xlu1 %v1712_v31  ;;  %v1713_v1 = vadd.f32 %v1709_v39, %v3348_v18  ;;  %v3061_v18 = vld [vmem:[%s3874_s8 + $0x24] ss:$16 sps:$4 sm:$0xff]   ;;  %2014 = vmatpush1.bf16.msra.mxu1 %v3056_v4  ;;  %v3106_v4 = vld [vmem:[%s3876_s10 + $0xc8] sm:$0xff]  }
 0x996   : > { %1972 = vmatprep.subr.bf16.mxu0 %v3061_v18  ;;  %2015 = vmatprep.subr.bf16.mxu1 %v3064_v5  ;;  %v3108_v18 = vld [vmem:[%s3876_s10 + $0x88] sm:$0xff]   ;;  %v3109_v5 = vld [vmem:[%s3876_s10 + $0x50] sm:$0xff]  }
 0x997   : > { %1718 = vadd.xlane.f32.xlu0 %v1713_v1  ;;  %1973 = vmatpush1.bf16.msra.mxu0 %v3059_v6  ;;  %v3110_v6 = vld [vmem:[%s3876_s10 + $0xd0] sm:$0xff]  }
 0x998   : > { %1974 = vmatprep.subr.bf16.mxu0 %v3067_v15  ;;  %v3120_v15 = vld [vmem:[%s3876_s10 + $0xa0] sm:$0xff]  }
 0x999   : > { %2016 = vmatpush1.bf16.msra.mxu1 %v3062_v7  ;;  %v3111_v7 = vld [vmem:[%s3876_s10 + $0x10] sm:$0xff]  }
 0x99a   : > { %2017 = vmatprep.subr.bf16.mxu1 %v3070_v3  ;;  %v3121_v3 = vld [vmem:[%s3876_s10 + $0x68] sm:$0xff]  }
 0x99b   : > { %1975 = vmatpush1.bf16.msra.mxu0 %v3065_v16  ;;  %v3122_v16 = vld [vmem:[%s3876_s10 + $0xe8] sm:$0xff]  }
 0x99c   : > { %1976 = vmatprep.subr.bf16.mxu0 %v3073_v20  ;;  %v3124_v20 = vld [vmem:[%s3876_s10 + $0xa8] sm:$0xff]  }
 0x99d   : > { %2018 = vmatpush1.bf16.msra.mxu1 %v3068_v19  ;;  %v3123_v19 = vld [vmem:[%s3876_s10 + $0x28] sm:$0xff]  }
 0x99e   : > { %2019 = vmatprep.subr.bf16.mxu1 %v3076_v13  ;;  %v3125_v13 = vld [vmem:[%s3876_s10 + $0x70] sm:$0xff]  }
 0x99f   : > { %1977 = vmatpush1.bf16.msra.mxu0 %v3071_v23  ;;  %v3126_v23 = vld [vmem:[%s3876_s10 + $0xf0] sm:$0xff]  }
 0x9a0   : > { %1978 = vmatprep.subr.bf16.mxu0 %v3079_v26  ;;  %v3128_v26 = vld [vmem:[%s3876_s10 + $0xb0] sm:$0xff]  }
 0x9a1   : > { %2020 = vmatpush1.bf16.msra.mxu1 %v3074_v25  ;;  %v3127_v25 = vld [vmem:[%s3876_s10 + $0x30] sm:$0xff]  }
 0x9a2   : > { %2021 = vmatprep.subr.bf16.mxu1 %v3082_v28  ;;  %v3129_v28 = vld [vmem:[%s3876_s10 + $0x78] sm:$0xff]  }
 0x9a3   : > { %1979 = vmatpush1.bf16.msra.mxu0 %v3077_v29  ;;  %v3130_v29 = vld [vmem:[%s3876_s10 + $0xf8] sm:$0xff]  }
 0x9a4   : > { %1980 = vmatprep.subr.bf16.mxu0 %v3085_v32  ;;  %v3132_v32 = vld [vmem:[%s3876_s10 + $0xb8] sm:$0xff]  }
 0x9a5   : > { %2022 = vmatpush1.bf16.msra.mxu1 %v3080_v30  ;;  %v3131_v30 = vld [vmem:[%s3876_s10 + $0x38] sm:$0xff]  }
 0x9a6   : > { %2023 = vmatprep.subr.bf16.mxu1 %v3088_v34  ;;  %v1788_v34 = vld [vmem:[%s3875_s9] sm:$0xf] }
 0x9a7   : > { %1981 = vmatpush1.bf16.msra.mxu0 %v3083_v41  ;;  %v1804_v41 = vsub.s32 3, %v3352_v21 }
 0x9a8   : > { %1982 = vmatprep.subr.bf16.mxu0 %v3091_v44  ;;  %v1801_v44 = vrot.slane %v1788_v34, %v533_v56 }
 0x9a9   : > { %2024 = vmatpush1.bf16.msra.mxu1 %v3086_v42  ;;  %v1793_v42 = vrot.slane %v1788_v34, %v525_v22 }
 0x9aa   : > { %2025 = vmatprep.subr.bf16.mxu1 %v3094_v45  ;;  %v1797_v45 = vrot.slane %v1788_v34, %v529_v24 }
 0x9ab   : > { %1983 = vmatpush1.bf16.msra.mxu0 %v3089_v46  ;;  %v1805_v46 = vrot.slane %v1788_v34, %v1804_v41 }
 0x9ac   : > { %1984 = vmatprep.subr.bf16.mxu0 %v3097_v37 }
 0x9ad   : > { %2026 = vmatpush1.bf16.msra.mxu1 %v3092_v27 }
 0x9ae   : > { %2027 = vmatprep.subr.bf16.mxu1 %v3100_v47 }
 0x9af   : > { %1985 = vmatpush1.bf16.msra.mxu0 %v3095_v48 }
 0x9b0   : > { %2774 = vmatprep.subr.bf16.mxu0 %v3101_v40 }
 0x9b1   : > { %2028 = vmatpush1.bf16.msra.mxu1 %v3098_v50 }
 0xa22   : > { %v1717_v8 = vpop.xlane.xlu1 %1716 }
 0xa23   : > { %v1721_v9 = vmul.f32 0.0078125, %v1717_v8  ;;  %v3112_v8 = vld [vmem:[%s3876_s10 + $0x90] sm:$0xff]  }
 0xa24   : > { %v1719_v10 = vpop.xlane.xlu0 %1718 }
 0xa25   : > { %v3605_v11 = vsub.f32 %v1712_v31, %v1721_v9  ;;  %v1722_v12 = vmul.f32 0.0078125, %v1719_v10  ;;  %v3102_v31 = vld [vmem:[%s3876_s10 + $0xc0] sm:$0xff]   ;;  %v3113_v9 = vld [vmem:[%s3876_s10 + $0x58] sm:$0xff]  }
 0xa26   : > { %2796 = vmatprep.subr.bf16.mxu1 %v3102_v31  ;;  %v3114_v10 = vld [vmem:[%s3876_s10 + $0xd8] sm:$0xff]  }
 0xa27   : > { %v3607_v61 = vsub.f32 %v1713_v1, %v1722_v12  ;;  %v1725_v62 = vmul.f32 %v3605_v11, %v3605_v11  ;;  %v3103_v1 = vld [vmem:[%s3876_s10] sm:$0xff]   ;;  %v3116_v12 = vld [vmem:[%s3876_s10 + $0x98] sm:$0xff]  }
 0xa29   : > { %1727 = vadd.xlane.f32.xlu0 %v1725_v62  ;;  %v1726_v14 = vmul.f32 %v3607_v61, %v3607_v61  ;;  %v3118_v62 = vld [vmem:[%s3876_s10 + $0xe0] sm:$0xff]  }
 0xa2d   : > { %1729 = vadd.xlane.f32.xlu0 %v1726_v14  ;;  %v3119_v14 = vld [vmem:[%s3876_s10 + $0x20] sm:$0xff]  }
 0xab6   : > { %v1728_v51 = vpop.xlane.xlu0 %1727 }
 0xab7   : > { %v1731_v52 = vmul.f32 0.0078125, %v1728_v51 }
 0xab9   : > { %v1733_v53 = vadd.f32 1e-12, %v1731_v52 }
 0xaba   : > { %v1730_v54 = vpop.xlane.xlu0 %1729 }
 0xabb   : > { %3165 = vrsqrt.f32 %v1733_v53  ;;  %v1732_v55 = vmul.f32 0.0078125, %v1730_v54 }
 0xabd   : > { %v1734_v33 = vadd.f32 1e-12, %v1732_v55 }
 0xabf   : > { %3167 = vrsqrt.f32 %v1734_v33 }
 0xac5   : > { %v3166_v35 = vpop.eup %3165 }
 0xac6   : > { %v1737_v36 = vmul.f32 %v3166_v35, %v3605_v11  ;;  %v3115_v11 = vld [vmem:[%s3876_s10 + $0x18] sm:$0xff]  }
 0xac8   : > { %v1745_v60 = vmul.f32 %v2653_v57, %v1737_v36 }
 0xac9   : > { %v3168_v58 = vpop.eup %3167 }
 0xaca   : > { %v1738_v59 = vmul.f32 %v3168_v58, %v3607_v61  ;;  %v3693_v38 = vadd.f32 %v2654_v63, %v1745_v60  ;;  %v3117_v61 = vld [vmem:[%s3876_s10 + $0x60] sm:$0xff]  }
 0xacc   : > { %v1746_v0 = vmul.f32 %v2653_v57, %v1738_v59 }
 0xace   : > { %v3695_v49 = vadd.f32 %v2654_v63, %v1746_v0 }
 0xad0   : > { %v1755_v39 = vpack.c.bf16 %v3695_v49, %v3693_v38 }
 0xad2   : > { %2003 = vmatmul.mubr.bf16.vlgmr.msra.gmra.mrb[16].mxu0 %v1755_v39  ;;  %2046 = vmatmul.mubr.bf16.vlgmr.msra.gmra.mrb[12].mxu1 %v1755_v39 }
 0xad3   : > { %2775 = vmatpush3.bf16.msra.mxu0 %v3103_v1  ;;  %2797 = vmatpush3.bf16.msra.mxu1 %v3104_v2 }
 0xad4   : > { %2776 = vmatprep.subr.bf16.mxu0 %v3105_v43  ;;  %2798 = vmatprep.subr.bf16.mxu1 %v3106_v4 }
 0xad7   : > { %2777 = vmatpush3.bf16.msra.mxu0 %v3107_v17  ;;  %2799 = vmatpush3.bf16.msra.mxu1 %v3108_v18 }
 0xad8   : > { %2778 = vmatprep.subr.bf16.mxu0 %v3109_v5  ;;  %2800 = vmatprep.subr.bf16.mxu1 %v3110_v6 }
 0xadb   : > { %2779 = vmatpush3.bf16.msra.mxu0 %v3111_v7  ;;  %2801 = vmatpush3.bf16.msra.mxu1 %v3112_v8 }
 0xadc   : > { %2780 = vmatprep.subr.bf16.mxu0 %v3113_v9  ;;  %2802 = vmatprep.subr.bf16.mxu1 %v3114_v10 }
 0xadf   : > { %2781 = vmatpush3.bf16.msra.mxu0 %v3115_v11  ;;  %2803 = vmatpush3.bf16.msra.mxu1 %v3116_v12 }
 0xae0   : > { %2782 = vmatprep.subr.bf16.mxu0 %v3117_v61  ;;  %2804 = vmatprep.subr.bf16.mxu1 %v3118_v62 }
 0xae3   : > { %2783 = vmatpush3.bf16.msra.mxu0 %v3119_v14  ;;  %2805 = vmatpush3.bf16.msra.mxu1 %v3120_v15 }
 0xae4   : > { %2784 = vmatprep.subr.bf16.mxu0 %v3121_v3  ;;  %2806 = vmatprep.subr.bf16.mxu1 %v3122_v16 }
 0xae7   : > { %2785 = vmatpush3.bf16.msra.mxu0 %v3123_v19  ;;  %2807 = vmatpush3.bf16.msra.mxu1 %v3124_v20 }
 0xae8   : > { %2786 = vmatprep.subr.bf16.mxu0 %v3125_v13  ;;  %2808 = vmatprep.subr.bf16.mxu1 %v3126_v23 }
 0xaeb   : > { %2787 = vmatpush3.bf16.msra.mxu0 %v3127_v25  ;;  %2809 = vmatpush3.bf16.msra.mxu1 %v3128_v26 }
 0xaec   : > { %2788 = vmatprep.subr.bf16.mxu0 %v3129_v28  ;;  %2810 = vmatprep.subr.bf16.mxu1 %v3130_v29 }
 0xaef   : > { %2789 = vmatpush3.bf16.msra.mxu0 %v3131_v30  ;;  %2811 = vmatpush3.bf16.msra.mxu1 %v3132_v32 }
 0xba5   : > { %v2004_v27 = vpop.f32.mrb[16].mxu0  ;;  %v2047_v37 = vpop.f32.mrb[12].mxu1 }
 0xba6   : > { %v3805_v47 = vadd.f32 %v2004_v27, %v1793_v42  ;;  %v3807_v48 = vadd.f32 %v2047_v37, %v1801_v44  ;;  %v2006_v50 = vpop.f32.mrb[17].mxu0  ;;  %v2049_v51 = vpop.f32.mrb[13].mxu1 }
 0xba7   : > { %v3809_v52 = vadd.f32 %v2006_v50, %v1797_v45  ;;  %v3811_v53 = vadd.f32 %v2049_v51, %v1805_v46  ;;  %v2008_v22 = vpop.f32.mrb[18].mxu0  ;;  %v2051_v54 = vpop.f32.mrb[14].mxu1 }
 0xba8   : > { %v2064_v56 = vmul.f32 0.044715, %v3805_v47  ;;  %v2066_v21 = vmul.f32 0.044715, %v3807_v48  ;;  %v2009_v24 = vadd.f32 %v2008_v22, %v1793_v42  ;;  %v2052_v55 = vadd.f32 %v2051_v54, %v1801_v44  ;;  %v2010_v33 = vpop.f32.mrb[19].mxu0  ;;  %v2053_v35 = vpop.f32.mrb[15].mxu1 }
 0xba9   : > { %v2065_v36 = vmul.f32 0.044715, %v3809_v52  ;;  %v2067_v57 = vmul.f32 0.044715, %v3811_v53  ;;  %v3817_v58 = vadd.f32 %v2010_v33, %v1797_v45  ;;  %v3819_v59 = vadd.f32 %v2053_v35, %v1805_v46 }
 0xbaa   : > { %v2072_v60 = vmul.f32 %v2064_v56, %v3805_v47  ;;  %v2074_v63 = vmul.f32 %v2066_v21, %v3807_v48  ;;  %v2068_v0 = vmul.f32 0.044715, %v2009_v24  ;;  %v2070_v39 = vmul.f32 0.044715, %v2052_v55 }
 0xbab   : > { %v2073_v40 = vmul.f32 %v2065_v36, %v3809_v52  ;;  %v2075_v31 = vmul.f32 %v2067_v57, %v3811_v53  ;;  %v2069_v1 = vmul.f32 0.044715, %v3817_v58  ;;  %v2071_v2 = vmul.f32 0.044715, %v3819_v59 }
 0xbac   : > { %v2080_v43 = vmul.f32 %v2072_v60, %v3805_v47  ;;  %v2082_v4 = vmul.f32 %v2074_v63, %v3807_v48  ;;  %v2076_v17 = vmul.f32 %v2068_v0, %v2009_v24  ;;  %v2078_v18 = vmul.f32 %v2070_v39, %v2052_v55 }
 0xbad   : > { %v2081_v5 = vmul.f32 %v2073_v40, %v3809_v52  ;;  %v2083_v6 = vmul.f32 %v2075_v31, %v3811_v53  ;;  %v2077_v7 = vmul.f32 %v2069_v1, %v3817_v58  ;;  %v2079_v8 = vmul.f32 %v2071_v2, %v3819_v59 }
 0xbae   : > { %v2088_v9 = vadd.f32 %v2080_v43, %v3805_v47  ;;  %v2090_v10 = vadd.f32 %v2082_v4, %v3807_v48  ;;  %v2084_v11 = vmul.f32 %v2076_v17, %v2009_v24  ;;  %v2086_v12 = vmul.f32 %v2078_v18, %v2052_v55 }
 0xbaf   : > { %v2085_v61 = vmul.f32 %v2077_v7, %v3817_v58  ;;  %v2087_v62 = vmul.f32 %v2079_v8, %v3819_v59  ;;  %v2089_v19 = vadd.f32 %v2081_v5, %v3809_v52  ;;  %v2091_v25 = vadd.f32 %v2083_v6, %v3811_v53 }
 0xbb0   : > { %v2096_v14 = vmul.f32 0.7978846, %v2088_v9  ;;  %v2098_v15 = vmul.f32 0.7978846, %v2090_v10  ;;  %v2092_v3 = vadd.f32 %v2084_v11, %v2009_v24  ;;  %v2094_v16 = vadd.f32 %v2086_v12, %v2052_v55 }
 0xbb1   : > { %v2093_v20 = vadd.f32 %v2085_v61, %v3817_v58  ;;  %v2097_v26 = vmul.f32 0.7978846, %v2089_v19  ;;  %v2095_v29 = vadd.f32 %v2087_v62, %v3819_v59  ;;  %v2099_v30 = vmul.f32 0.7978846, %v2091_v25 }
 0xbb2   : > { %3169 = vtanh.f32 %v2096_v14  ;;  %v2100_v13 = vmul.f32 0.7978846, %v2092_v3  ;;  %v2102_v23 = vmul.f32 0.7978846, %v2094_v16  ;;  %v2056_v27 = vmul.f32 0.5, %v3805_v47 }
 0xbb3   : > { %3171 = vtanh.f32 %v2098_v15  ;;  %v2101_v28 = vmul.f32 0.7978846, %v2093_v20  ;;  %v2103_v32 = vmul.f32 0.7978846, %v2095_v29  ;;  %v2060_v37 = vmul.f32 0.5, %v2009_v24 }
 0xbb4   : > { %3173 = vtanh.f32 %v2100_v13  ;;  %v2058_v22 = vmul.f32 0.5, %v3807_v48  ;;  %v2062_v54 = vmul.f32 0.5, %v2052_v55  ;;  %v2057_v33 = vmul.f32 0.5, %v3809_v52 }
 0xbb5   : > { %3175 = vtanh.f32 %v2102_v23  ;;  %v2061_v63 = vmul.f32 0.5, %v3817_v58  ;;  %v2059_v24 = vmul.f32 0.5, %v3811_v53  ;;  %v2063_v31 = vmul.f32 0.5, %v3819_v59  ;;  %v2687_v53 = vld [vmem:[%s3877_s11] ss:$0 sm:$0xff] }
 0xbb6   : > { %3177 = vtanh.f32 %v2097_v26 }
 0xbb7   : > { %3179 = vtanh.f32 %v2101_v28 }
 0xbb8   : > { %3181 = vtanh.f32 %v2099_v30 }
 0xbb9   : > { %3183 = vtanh.f32 %v2103_v32 }
 0xbbc   : > { %v3170_v34 = vpop.eup %3169 }
 0xbbd   : > { %v3172_v41 = vpop.eup %3171  ;;  %v2112_v42 = vadd.f32 1.0, %v3170_v34 }
 0xbbe   : > { %v3174_v44 = vpop.eup %3173  ;;  %v2114_v45 = vadd.f32 1.0, %v3172_v41 }
 0xbbf   : > { %v3176_v46 = vpop.eup %3175  ;;  %v2116_v50 = vadd.f32 1.0, %v3174_v44  ;;  %v2120_v36 = vmul.f32 %v2112_v42, %v2056_v27  ;;  %v2720_v27 = vld [vmem:[%s3878_s12] ss:$0 sm:$0xff] }
 0xbc0   : > { %v3178_v51 = vpop.eup %3177  ;;  %v2118_v56 = vadd.f32 1.0, %v3176_v46  ;;  %v2122_v39 = vmul.f32 %v2114_v45, %v2058_v22 }
 0xbc1   : > { %v3180_v21 = vpop.eup %3179  ;;  %v2113_v35 = vadd.f32 1.0, %v3178_v51  ;;  %v2124_v57 = vmul.f32 %v2116_v50, %v2060_v37  ;;  %v2721_v51 = vld [vmem:[%s3879_s13] ss:$0 sm:$0xff] }
 0xbc2   : > { %v3182_v60 = vpop.eup %3181  ;;  %v2117_v0 = vadd.f32 1.0, %v3180_v21  ;;  %v2126_v40 = vmul.f32 %v2118_v56, %v2062_v54 }
 0xbc3   : > { %v3184_v47 = vpop.eup %3183  ;;  %v2115_v48 = vadd.f32 1.0, %v3182_v60  ;;  %v2128_v55 = vpack.c.bf16 %v2124_v57, %v2120_v36  ;;  %v2121_v1 = vmul.f32 %v2113_v35, %v2057_v33 }
 0xbc4   : > { %v2125_v2 = vmul.f32 %v2117_v0, %v2061_v63  ;;  %v2119_v43 = vadd.f32 1.0, %v3184_v47  ;;  %v2130_v52 = vpack.c.bf16 %v2126_v40, %v2122_v39 }
 0xbc5   : > { %v2123_v17 = vmul.f32 %v2115_v48, %v2059_v24 }
 0xbc6   : > { %v2129_v4 = vpack.c.bf16 %v2125_v2, %v2121_v1  ;;  %v2127_v18 = vmul.f32 %v2119_v43, %v2063_v31 }
 0xbc8   : > { %2427 = vmatprep.mubr.bf16.mxu0 %v2129_v4  ;;  %v2131_v5 = vpack.c.bf16 %v2127_v18, %v2123_v17 }
 0xbc9   : > { %2428 = vmatmul.mubr.bf16.vlgmr.msra.gmra.mrb[20].mxu0 %v2128_v55 }
 0xbca   : > { %2468 = vmatprep.mubr.bf16.mxu1 %v2131_v5 }
 0xbcb   : > { %2469 = vmatmul.mubr.bf16.vlgmr.msra.gmra.mrb[16].mxu1 %v2130_v52 }
 0xc9c   : > { %v2790_v58 = vpop.f32.mrb[20].mxu0 }
 0xc9d   : > { %v2791_v59 = vpop.f32.mrb[21].mxu0 }
 0xc9e   : > { %v2812_v6 = vpop.f32.mrb[16].mxu1  ;;  %v2792_v7 = vadd.f32 %v2791_v59, %v2790_v58  ;;  %v2793_v8 = vpop.f32.mrb[22].mxu0 }
 0xc9f   : > { %v2813_v9 = vpop.f32.mrb[17].mxu1  ;;  %v2794_v10 = vpop.f32.mrb[23].mxu0 }
 0xca0   : > { %v2430_v11 = vadd.f32 %v2792_v7, %v2687_v53  ;;  %v2814_v12 = vadd.f32 %v2813_v9, %v2812_v6  ;;  %v2815_v61 = vpop.f32.mrb[18].mxu1  ;;  %v2795_v62 = vadd.f32 %v2794_v10, %v2793_v8 }
 0xca1   : > { %v2816_v14 = vpop.f32.mrb[19].mxu1 }
 0xca2   : > { %v2471_v15 = vadd.f32 %v2814_v12, %v2430_v11  ;;  %v2433_v3 = vadd.f32 %v2795_v62, %v2687_v53  ;;  %v2817_v16 = vadd.f32 %v2816_v14, %v2815_v61 }
 0xca4   : > { %v2474_v19 = vadd.f32 %v2817_v16, %v2433_v3  ;;  %v2477_v20 = vadd.f32 %v2471_v15, %v3693_v38 }
 0xca6   : > { %2481 = vadd.xlane.f32.xlu1 %v2477_v20  ;;  %v2478_v13 = vadd.f32 %v2474_v19, %v3695_v49 }
 0xca8   : > { %2483 = vadd.xlane.f32.xlu0 %v2478_v13 }
 0xd33   : > { %v2482_v23 = vpop.xlane.xlu1 %2481 }
 0xd34   : > { %v2485_v25 = vmul.f32 0.0078125, %v2482_v23 }
 0xd35   : > { %v2484_v26 = vpop.xlane.xlu0 %2483 }
 0xd36   : > { %v2487_v28 = vsub.f32 %v2477_v20, %v2485_v25  ;;  %v2486_v29 = vmul.f32 0.0078125, %v2484_v26 }
 0xd38   : > { %v2488_v30 = vsub.f32 %v2478_v13, %v2486_v29  ;;  %v2489_v32 = vmul.f32 %v2487_v28, %v2487_v28 }
 0xd3a   : > { %2491 = vadd.xlane.f32.xlu1 %v2489_v32  ;;  %v2490_v34 = vmul.f32 %v2488_v30, %v2488_v30 }
 0xd3c   : > { %2493 = vadd.xlane.f32.xlu0 %v2490_v34 }
 0xdc7   : > { %v2492_v41 = vpop.xlane.xlu1 %2491 }
 0xdc8   : > { %v2495_v42 = vmul.f32 0.0078125, %v2492_v41 }
 0xdc9   : > { %v2494_v44 = vpop.xlane.xlu0 %2493 }
 0xdca   : > { %v2497_v45 = vadd.f32 1e-12, %v2495_v42  ;;  %v2496_v38 = vmul.f32 0.0078125, %v2494_v44 }
 0xdcc   : > { %3185 = vrsqrt.f32 %v2497_v45  ;;  %v2498_v46 = vadd.f32 1e-12, %v2496_v38 }
 0xdce   : > { %3187 = vrsqrt.f32 %v2498_v46 }
 0xdd6   : > { %v3186_v49 = vpop.eup %3185 }
 0xdd7   : > { %v2501_v37 = vmul.f32 %v3186_v49, %v2487_v28 }
 0xdd8   : > { %v3188_v50 = vpop.eup %3187 }
 0xdd9   : > { %v2509_v22 = vmul.f32 %v2720_v27, %v2501_v37  ;;  %v2502_v54 = vmul.f32 %v3188_v50, %v2488_v30 }
 0xddb   : > { %v2517_v56 = vadd.f32 %v2721_v51, %v2509_v22  ;;  %v2510_v21 = vmul.f32 %v2720_v27, %v2502_v54 }
 0xddd   : > { %2519 = vst [vmem:[%s483_s26] sm:$0xff] %v2517_v56  ;;  %v2518_v33 = vadd.f32 %v2721_v51, %v2510_v21 }
 0xddf   : > { %2520 = vst [vmem:[%s483_s26 + $0x8] sm:$0xff] %v2518_v33 }
 0xde0 PF: > { %s24_s29 = sadd.s32 1, %s3195_s29  }
 0xde1   : > { %p21_p5 = scmp.ge.s32.totalorder %s24_s29, 4  }
 0xde3   :  { %23 = sbr.rel (!%p21_p5) target bundleno = 1 (0x1), region = 109 }

</bundles_post_ra>
